<compile_context>
chip_gen: v7x
topology: tpu7x:2x2x1
jax: 0.10.0
libtpu: 0.0.40
codegen_flags: <defaults>
</compile_context>

<pallas_src>
import numpy as np
import jax
import jax.numpy as jnp
from jax import lax
from jax.experimental import pallas as pl
from jax.experimental.pallas import tpu as pltpu

RADIUS = 5
SIGMA = 1.5
NUM_COLORS = 16
KMEANS_ITERS = 10
NUM_CHANNELS = 3
QUANTILE = 0.8
QUANT_BISECT_ITERS = 24


def _gaussian_1d(radius, sigma):
    c = np.linspace(-radius, radius, 2 * radius + 1)
    k = np.exp(-(c ** 2) / (2.0 * sigma ** 2))
    return (k / k.sum()).astype(np.float32)


# exp(-(x^2+y^2)/2s^2)/Z == outer(g1, g1) with g1 normalised -> separable -> banded.
_GAUSS_1D = _gaussian_1d(RADIUS, SIGMA)
_SMOOTH_121 = (1.0, 2.0, 1.0)
_DIFF_101 = (-1.0, 0.0, 1.0)


def _band_matrix(n, taps):
    """B[i, j] = taps[j - i + R]; B @ plane == 'same' zero-padded 1-D correlation."""
    r = len(taps) // 2
    m = np.zeros((n, n), np.float32)
    for t in range(len(taps)):
        off = t - r
        idx = np.arange(max(0, -off), min(n, n - off))
        m[idx, idx + off] = float(taps[t])
    return m


# ---------------------------------------------------------------------------
# In-kernel helpers (pure traced values).
# ---------------------------------------------------------------------------
def _shift_rows(a, dy):
    """out[y, x] = a[y + dy, x], zeros outside (sublane shift)."""
    if dy == 0:
        return a
    h, w = a.shape
    z = jnp.zeros((abs(dy), w), a.dtype)
    if dy > 0:
        return jnp.concatenate([a[dy:, :], z], axis=0)
    return jnp.concatenate([z, a[:h + dy, :]], axis=0)


def _shift_cols(a, dx):
    """out[y, x] = a[y, x + dx], zeros outside (lane shift)."""
    if dx == 0:
        return a
    h, w = a.shape
    z = jnp.zeros((h, abs(dx)), a.dtype)
    if dx > 0:
        return jnp.concatenate([a[:, dx:], z], axis=1)
    return jnp.concatenate([z, a[:, :w + dx]], axis=1)


def _conv1d_rows(a, taps):
    r = len(taps) // 2
    out = None
    for i, wgt in enumerate(taps):
        if wgt == 0.0:
            continue
        t = wgt * _shift_rows(a, i - r)
        out = t if out is None else out + t
    return out


def _conv1d_cols(a, taps):
    r = len(taps) // 2
    out = None
    for i, wgt in enumerate(taps):
        if wgt == 0.0:
            continue
        t = wgt * _shift_cols(a, i - r)
        out = t if out is None else out + t
    return out


def _max3x3(a):
    """3x3 neighbourhood max (binary dilation), zero-padded borders."""
    out = a
    for dy in (-1, 0, 1):
        ra = _shift_rows(a, dy)
        for dx in (-1, 0, 1):
            if dy == 0 and dx == 0:
                continue
            out = jnp.maximum(out, _shift_cols(ra, dx))
    return out


def _sum_all(a):
    return jnp.sum(jnp.sum(a, axis=1, keepdims=True), axis=0, keepdims=True)


def _max_all(a):
    return jnp.max(jnp.max(a, axis=1, keepdims=True), axis=0, keepdims=True)


def _min_all(a):
    return jnp.min(jnp.min(a, axis=1, keepdims=True), axis=0, keepdims=True)


def _minmax_norm(a):
    amin = _min_all(a)
    amax = _max_all(a)
    rng = amax - amin
    rng = jnp.where(rng == 0.0, 1.0, rng)
    return (a - amin) * (1.0 / rng)      # exact scalar reciprocal (no approx)


# ---------------------------------------------------------------------------
# Fused SRD kernel: edges + threshold + hysteresis + gaussian + k-means + norm.
# ---------------------------------------------------------------------------
def _srd_kernel(x_ref, data_ref, grow_ref, gcol_ref, c0_ref, nd_ref, ns_ref):
    # x_ref:    (1, 3, H, W)    VMEM   colour planes (for grayscale / Sobel)
    # data_ref: (1, 4, H*W)     VMEM   rows [1, r, g, b]  (lane-dense k-means data)
    # grow_ref: (H, H)          VMEM   gaussian band matrix (row pass)
    # gcol_ref: (W, W)          VMEM   gaussian band matrix (col pass)
    # c0_ref:   (1, 16, 3)      VMEM   initial k-means centres
    # nd_ref:   (1, H, W)       VMEM   normalised edge density (output)
    # ns_ref:   (1, 1, H*W)     VMEM   normalised colour sparsity, flat (output)
    _, _, hh, ww = x_ref.shape
    n_pix = hh * ww

    # ---------------- grayscale + separable Sobel ----------------
    r = x_ref[0, 0, :, :]
    g = x_ref[0, 1, :, :]
    b = x_ref[0, 2, :, :]
    gray = 0.299 * r + 0.587 * g + 0.114 * b
    # Sx = [1,2,1]^T (x) [-1,0,1]    Sy = [-1,0,1]^T (x) [1,2,1]
    gx = _conv1d_cols(_conv1d_rows(gray, _SMOOTH_121), _DIFF_101)
    gy = _conv1d_rows(_conv1d_cols(gray, _SMOOTH_121), _DIFF_101)
    edge = jnp.sqrt(gx * gx + gy * gy)

    # ---------------- 0.8-quantile threshold (in-kernel bisection) ----------------
    # TODO(synk): approximates torch.quantile (no sort); converges to the smallest
    # value t with count(edge <= t) >= 0.8*N, accurate to ~emax * 2^-24.
    emax = _max_all(edge)                                   # (1, 1)
    target = QUANTILE * float(n_pix)

    def _bisect(_, lohi):
        lo, hi = lohi
        mid = 0.5 * (lo + hi)
        cnt = _sum_all((edge <= mid).astype(jnp.float32))   # (1, 1)
        up = cnt < target
        return jnp.where(up, mid, lo), jnp.where(up, hi, mid)

    _, high = lax.fori_loop(0, QUANT_BISECT_ITERS, _bisect,
                            (jnp.zeros_like(emax), emax))
    low = 0.5 * high

    # ---------------- hysteresis (two dilation passes) ----------------
    strong = (edge > high).astype(jnp.float32)
    weak = jnp.logical_and(edge <= high, edge >= low).astype(jnp.float32)
    final = strong
    for _ in range(2):
        neigh = _max3x3(final)
        final = jnp.maximum(final, jnp.where(neigh > 0.0, weak, 0.0))

    # ---------------- 11x11 gaussian blur: two banded MXU matmuls ----------------
    density = jnp.dot(
        grow_ref[...],
        jnp.dot(final, gcol_ref[...], preferred_element_type=jnp.float32),
        preferred_element_type=jnp.float32)                 # (H, W)

    # ---------------- colour sparsity: lane-dense Lloyd k-means ----------------
    # TODO(synk): cv2.kmeans(KMEANS_RANDOM_CENTERS) replaced by a deterministic
    # fixed-iteration Lloyd k-means seeded with evenly-strided pixels.
    data = data_ref[0]                                      # (4, HW) = [1, r, g, b]
    kidx = lax.broadcasted_iota(jnp.int32, (NUM_COLORS, 1), 0).astype(jnp.float32)

    def _assign(centers):                                   # centers: (16, 3)
        # argmin_k ||x - c_k||^2 == argmin_k (||c_k||^2 - 2<x, c_k>)  (drop ||x||^2)
        cn2 = jnp.sum(centers * centers, axis=1, keepdims=True)        # (16, 1)
        caug = jnp.concatenate([cn2, -2.0 * centers], axis=1)          # (16, 4)
        scores = jnp.dot(caug, data, preferred_element_type=jnp.float32)  # (16, HW)
        dmin = scores[0:1, :]
        lab = jnp.zeros_like(dmin)
        for k in range(1, NUM_COLORS):                      # first-min tie-break
            row = scores[k:k + 1, :]
            better = row < dmin
            dmin = jnp.where(better, row, dmin)
            lab = jnp.where(better, float(k), lab)
        return lab                                          # (1, HW)

    def _masks(lab):
        return (lab == kidx).astype(jnp.float32)            # (16, HW)

    def _body(_, carry):
        centers, _, _ = carry
        lab = _assign(centers)
        masks = _masks(lab)
        # counts + per-channel sums for all clusters in ONE MXU matmul:
        # stats[k] = [count_k, sum_r_k, sum_g_k, sum_b_k]
        stats = lax.dot_general(masks, data,
                                dimension_numbers=(((1,), (1,)), ((), ())),
                                preferred_element_type=jnp.float32)    # (16, 4)
        cnt = stats[:, 0:1]                                            # (16, 1)
        sums = stats[:, 1:4]                                           # (16, 3)
        centers = jnp.where(cnt > 0.0, sums / jnp.maximum(cnt, 1.0), centers)
        return centers, lab, cnt

    carry0 = (c0_ref[0],                                   # (16, 3)
              jnp.zeros((1, n_pix), jnp.float32),          # labels
              jnp.zeros((NUM_COLORS, 1), jnp.float32))     # counts
    _, lab_f, cnt_f = lax.fori_loop(0, KMEANS_ITERS, _body, carry0)

    # labels/counts are carried out of the loop -> no extra assignment pass.
    neglog = -jnp.log(cnt_f * (1.0 / float(n_pix)) + 1e-9)             # (16, 1)
    sparsity = jnp.sum(_masks(lab_f) * neglog, axis=0, keepdims=True)  # (1, HW)

    # ---------------- per-image min-max normalisation ----------------
    nd_ref[...] = _minmax_norm(density)[None, :, :]
    ns_ref[...] = _minmax_norm(sparsity)[None, :, :]


# ---------------------------------------------------------------------------
# Wrapper.
# ---------------------------------------------------------------------------
def _vmem_limit_bytes():
    # 128 MiB on v5e/v6e, 64 MiB on v7x: derive the scoped limit from the chip
    # instead of hard-coding a v7x-conservative value.
    try:
        cap = int(pltpu.get_tpu_info().vmem_capacity_bytes)
    except Exception:
        cap = 64 * 1024 * 1024
    return int(min(max(cap - 16 * 1024 * 1024, 32 * 1024 * 1024), 100 * 1024 * 1024))


def salient_region_detector(x, alpha=1.0, beta=1.0):
    b, c, h, w = x.shape
    assert c == NUM_CHANNELS, "expects RGB NCHW input"
    x = x.astype(jnp.float32)
    hw = h * w

    # k-means data matrix: rows [1, r, g, b], lane-dense (HW last) -> the per-cluster
    # distance terms and count/sum reductions become MXU matmuls inside the kernel.
    x_flat = x.reshape(b, c, hw)
    data = jnp.concatenate([jnp.ones((b, 1, hw), jnp.float32), x_flat], axis=1)

    # deterministic k-means seeds: evenly-strided pixels -> (B, 16, 3)
    stride = max(hw // NUM_COLORS, 1)
    centers0 = jnp.transpose(x_flat[:, :, ::stride][:, :, :NUM_COLORS], (0, 2, 1))
    centers0 = centers0.astype(jnp.float32)

    # banded gaussian matrices: band @ plane / plane @ band == 'same' zero-padded conv.
    grow = jnp.asarray(_band_matrix(h, _GAUSS_1D))          # (H, H)
    gcol = jnp.asarray(_band_matrix(w, _GAUSS_1D))          # (W, W)

    params = pltpu.CompilerParams(
        dimension_semantics=("parallel",),   # batch independent (both TCs on v7x)
        vmem_limit_bytes=_vmem_limit_bytes(),
    )

    nd, ns = pl.pallas_call(
        _srd_kernel,
        out_shape=(jax.ShapeDtypeStruct((b, h, w), jnp.float32),
                   jax.ShapeDtypeStruct((b, 1, hw), jnp.float32)),
        grid_spec=pltpu.PrefetchScalarGridSpec(
            num_scalar_prefetch=0,
            grid=(b,),
            in_specs=[
                pl.BlockSpec((1, c, h, w), lambda i: (i, 0, 0, 0)),            # x
                pl.BlockSpec((1, c + 1, hw), lambda i: (i, 0, 0)),             # data
                pl.BlockSpec((h, h), lambda i: (0, 0)),                        # gauss rows
                pl.BlockSpec((w, w), lambda i: (0, 0)),                        # gauss cols
                pl.BlockSpec((1, NUM_COLORS, NUM_CHANNELS), lambda i: (i, 0, 0)),  # seeds
            ],
            out_specs=(pl.BlockSpec((1, h, w), lambda i: (i, 0, 0)),
                       pl.BlockSpec((1, 1, hw), lambda i: (i, 0, 0))),
        ),
        compiler_params=params,
    )(x, data, grow, gcol, centers0)

    # exact sigmoid combine (keeps output strictly inside (0, 1)); trivially cheap.
    sal = jax.nn.sigmoid(alpha * nd + beta * ns.reshape(b, h, w))
    return sal.reshape(b, 1, h, w)   # NCHW saliency map, like the PyTorch module


if __name__ == "__main__":
    key = jax.random.PRNGKey(0)
    x = jax.random.uniform(key, (2, 3, 16, 16), dtype=jnp.float32)
    out = jax.jit(salient_region_detector)(x)
    out = jax.block_until_ready(out)
    assert out.shape == (2, 1, 16, 16)
    assert out.dtype == jnp.float32
    assert bool(jnp.all(jnp.isfinite(out)))
    assert bool(jnp.all((out >= 0.0) & (out <= 1.0)))
    print("KERNEL_OK")
</pallas_src>

<mosaic_0001>
module attributes {stable_mosaic.version = 11 : i64} {
  func.func @_srd_kernel(%arg0: i32, %arg1: memref<1x3x16x16xf32, #tpu.memory_space<vmem>>, %arg2: memref<1x4x256xf32, #tpu.memory_space<vmem>>, %arg3: memref<16x16xf32, #tpu.memory_space<vmem>>, %arg4: memref<16x16xf32, #tpu.memory_space<vmem>>, %arg5: memref<1x16x3xf32, #tpu.memory_space<vmem>>, %arg6: memref<1x16x16xf32, #tpu.memory_space<vmem>>, %arg7: memref<1x1x256xf32, #tpu.memory_space<vmem>>) attributes {dimension_semantics = [#tpu.dimension_semantics<parallel>], iteration_bounds = array<i64: 2>, scalar_prefetch = 0 : i64, scratch_operands = 0 : i64, tpu.core_type = #tpu.core_type<tc>, window_params = [{transform_indices = @transform_0, window_bounds = array<i64: 1, 3, 16, 16>}, {transform_indices = @transform_1, window_bounds = array<i64: 1, 4, 256>}, {pipeline_mode = #tpu.pipeline_mode<synchronous>, transform_indices = @transform_2, window_bounds = array<i64: 16, 16>}, {pipeline_mode = #tpu.pipeline_mode<synchronous>, transform_indices = @transform_3, window_bounds = array<i64: 16, 16>}, {transform_indices = @transform_4, window_bounds = array<i64: 1, 16, 3>}, {transform_indices = @transform_5, window_bounds = array<i64: 1, 16, 16>}, {transform_indices = @transform_6, window_bounds = array<i64: 1, 1, 256>}]} {
    %c0 = arith.constant 0 : index
    %c0_0 = arith.constant 0 : index
    %c0_1 = arith.constant 0 : index
    %c0_2 = arith.constant 0 : index
    %0 = vector.load %arg1[%c0, %c0_0, %c0_1, %c0_2] : memref<1x3x16x16xf32, #tpu.memory_space<vmem>>, vector<1x1x16x16xf32>
    %1 = vector.shape_cast %0 : vector<1x1x16x16xf32> to vector<16x16xf32>
    %c0_3 = arith.constant 0 : index
    %c1 = arith.constant 1 : index
    %c0_4 = arith.constant 0 : index
    %c0_5 = arith.constant 0 : index
    %2 = vector.load %arg1[%c0_3, %c1, %c0_4, %c0_5] : memref<1x3x16x16xf32, #tpu.memory_space<vmem>>, vector<1x1x16x16xf32>
    %3 = vector.shape_cast %2 : vector<1x1x16x16xf32> to vector<16x16xf32>
    %c0_6 = arith.constant 0 : index
    %c2 = arith.constant 2 : index
    %c0_7 = arith.constant 0 : index
    %c0_8 = arith.constant 0 : index
    %4 = vector.load %arg1[%c0_6, %c2, %c0_7, %c0_8] : memref<1x3x16x16xf32, #tpu.memory_space<vmem>>, vector<1x1x16x16xf32>
    %5 = vector.shape_cast %4 : vector<1x1x16x16xf32> to vector<16x16xf32>
    %cst = arith.constant 2.990000e-01 : f32
    %6 = vector.broadcast %cst : f32 to vector<16x16xf32>
    %7 = arith.mulf %6, %1 : vector<16x16xf32>
    %cst_9 = arith.constant 5.870000e-01 : f32
    %8 = vector.broadcast %cst_9 : f32 to vector<16x16xf32>
    %9 = arith.mulf %8, %3 : vector<16x16xf32>
    %10 = arith.addf %7, %9 : vector<16x16xf32>
    %cst_10 = arith.constant 1.140000e-01 : f32
    %11 = vector.broadcast %cst_10 : f32 to vector<16x16xf32>
    %12 = arith.mulf %11, %5 : vector<16x16xf32>
    %13 = arith.addf %10, %12 : vector<16x16xf32>
    %cst_11 = arith.constant 0.000000e+00 : f32
    %14 = vector.broadcast %cst_11 : f32 to vector<1x16xf32>
    %15 = vector.extract_strided_slice %13 {offsets = [0, 0], sizes = [15, 16], strides = [1, 1]} : vector<16x16xf32> to vector<15x16xf32>
    %16 = tpu.concatenate %14, %15 in 0 : vector<1x16xf32>, vector<15x16xf32> -> vector<16x16xf32>
    %cst_12 = arith.constant 1.000000e+00 : f32
    %17 = vector.broadcast %cst_12 : f32 to vector<16x16xf32>
    %18 = arith.mulf %17, %16 : vector<16x16xf32>
    %cst_13 = arith.constant 2.000000e+00 : f32
    %19 = vector.broadcast %cst_13 : f32 to vector<16x16xf32>
    %20 = arith.mulf %19, %13 : vector<16x16xf32>
    %21 = arith.addf %18, %20 : vector<16x16xf32>
    %cst_14 = arith.constant 0.000000e+00 : f32
    %22 = vector.broadcast %cst_14 : f32 to vector<1x16xf32>
    %23 = vector.extract_strided_slice %13 {offsets = [1, 0], sizes = [15, 16], strides = [1, 1]} : vector<16x16xf32> to vector<15x16xf32>
    %24 = tpu.concatenate %23, %22 in 0 : vector<15x16xf32>, vector<1x16xf32> -> vector<16x16xf32>
    %cst_15 = arith.constant 1.000000e+00 : f32
    %25 = vector.broadcast %cst_15 : f32 to vector<16x16xf32>
    %26 = arith.mulf %25, %24 : vector<16x16xf32>
    %27 = arith.addf %21, %26 : vector<16x16xf32>
    %cst_16 = arith.constant 0.000000e+00 : f32
    %28 = vector.broadcast %cst_16 : f32 to vector<16x1xf32>
    %29 = vector.extract_strided_slice %27 {offsets = [0, 0], sizes = [16, 15], strides = [1, 1]} : vector<16x16xf32> to vector<16x15xf32>
    %30 = tpu.concatenate %28, %29 in 1 : vector<16x1xf32>, vector<16x15xf32> -> vector<16x16xf32>
    %cst_17 = arith.constant -1.000000e+00 : f32
    %31 = vector.broadcast %cst_17 : f32 to vector<16x16xf32>
    %32 = arith.mulf %31, %30 : vector<16x16xf32>
    %cst_18 = arith.constant 0.000000e+00 : f32
    %33 = vector.broadcast %cst_18 : f32 to vector<16x1xf32>
    %34 = vector.extract_strided_slice %27 {offsets = [0, 1], sizes = [16, 15], strides = [1, 1]} : vector<16x16xf32> to vector<16x15xf32>
    %35 = tpu.concatenate %34, %33 in 1 : vector<16x15xf32>, vector<16x1xf32> -> vector<16x16xf32>
    %cst_19 = arith.constant 1.000000e+00 : f32
    %36 = vector.broadcast %cst_19 : f32 to vector<16x16xf32>
    %37 = arith.mulf %36, %35 : vector<16x16xf32>
    %38 = arith.addf %32, %37 : vector<16x16xf32>
    %cst_20 = arith.constant 0.000000e+00 : f32
    %39 = vector.broadcast %cst_20 : f32 to vector<16x1xf32>
    %40 = vector.extract_strided_slice %13 {offsets = [0, 0], sizes = [16, 15], strides = [1, 1]} : vector<16x16xf32> to vector<16x15xf32>
    %41 = tpu.concatenate %39, %40 in 1 : vector<16x1xf32>, vector<16x15xf32> -> vector<16x16xf32>
    %cst_21 = arith.constant 1.000000e+00 : f32
    %42 = vector.broadcast %cst_21 : f32 to vector<16x16xf32>
    %43 = arith.mulf %42, %41 : vector<16x16xf32>
    %cst_22 = arith.constant 2.000000e+00 : f32
    %44 = vector.broadcast %cst_22 : f32 to vector<16x16xf32>
    %45 = arith.mulf %44, %13 : vector<16x16xf32>
    %46 = arith.addf %43, %45 : vector<16x16xf32>
    %cst_23 = arith.constant 0.000000e+00 : f32
    %47 = vector.broadcast %cst_23 : f32 to vector<16x1xf32>
    %48 = vector.extract_strided_slice %13 {offsets = [0, 1], sizes = [16, 15], strides = [1, 1]} : vector<16x16xf32> to vector<16x15xf32>
    %49 = tpu.concatenate %48, %47 in 1 : vector<16x15xf32>, vector<16x1xf32> -> vector<16x16xf32>
    %cst_24 = arith.constant 1.000000e+00 : f32
    %50 = vector.broadcast %cst_24 : f32 to vector<16x16xf32>
    %51 = arith.mulf %50, %49 : vector<16x16xf32>
    %52 = arith.addf %46, %51 : vector<16x16xf32>
    %cst_25 = arith.constant 0.000000e+00 : f32
    %53 = vector.broadcast %cst_25 : f32 to vector<1x16xf32>
    %54 = vector.extract_strided_slice %52 {offsets = [0, 0], sizes = [15, 16], strides = [1, 1]} : vector<16x16xf32> to vector<15x16xf32>
    %55 = tpu.concatenate %53, %54 in 0 : vector<1x16xf32>, vector<15x16xf32> -> vector<16x16xf32>
    %cst_26 = arith.constant -1.000000e+00 : f32
    %56 = vector.broadcast %cst_26 : f32 to vector<16x16xf32>
    %57 = arith.mulf %56, %55 : vector<16x16xf32>
    %cst_27 = arith.constant 0.000000e+00 : f32
    %58 = vector.broadcast %cst_27 : f32 to vector<1x16xf32>
    %59 = vector.extract_strided_slice %52 {offsets = [1, 0], sizes = [15, 16], strides = [1, 1]} : vector<16x16xf32> to vector<15x16xf32>
    %60 = tpu.concatenate %59, %58 in 0 : vector<15x16xf32>, vector<1x16xf32> -> vector<16x16xf32>
    %cst_28 = arith.constant 1.000000e+00 : f32
    %61 = vector.broadcast %cst_28 : f32 to vector<16x16xf32>
    %62 = arith.mulf %61, %60 : vector<16x16xf32>
    %63 = arith.addf %57, %62 : vector<16x16xf32>
    %64 = arith.mulf %38, %38 : vector<16x16xf32>
    %65 = arith.mulf %63, %63 : vector<16x16xf32>
    %66 = arith.addf %64, %65 : vector<16x16xf32>
    %67 = math.sqrt %66 : vector<16x16xf32>
    %cst_29 = arith.constant dense<0xFF800000> : vector<16xf32>
    %68 = vector.multi_reduction <maximumf>, %67, %cst_29 [1] : vector<16x16xf32> to vector<16xf32>
    %69 = vector.shape_cast %68 : vector<16xf32> to vector<16x1xf32>
    %cst_30 = arith.constant dense<0xFF800000> : vector<1xf32>
    %70 = vector.multi_reduction <maximumf>, %69, %cst_30 [0] : vector<16x1xf32> to vector<1xf32>
    %71 = vector.shape_cast %70 : vector<1xf32> to vector<1x1xf32>
    %cst_31 = arith.constant 0.000000e+00 : f32
    %72 = vector.broadcast %cst_31 : f32 to vector<1x1xf32>
    %c0_i32 = arith.constant 0 : i32
    %c24_i32 = arith.constant 24 : i32
    %73 = arith.addi %c0_i32, %c24_i32 : i32
    %c1_i32 = arith.constant 1 : i32
    %74:2 = scf.for %arg8 = %c0_i32 to %73 step %c1_i32 iter_args(%arg9 = %72, %arg10 = %71) -> (vector<1x1xf32>, vector<1x1xf32>)  : i32 {
      %234 = arith.addf %arg9, %arg10 : vector<1x1xf32>
      %cst_93 = arith.constant 5.000000e-01 : f32
      %235 = vector.broadcast %cst_93 : f32 to vector<1x1xf32>
      %236 = arith.mulf %235, %234 : vector<1x1xf32>
      %237 = vector.broadcast %236 : vector<1x1xf32> to vector<16x16xf32>
      %238 = arith.cmpf ole, %67, %237 : vector<16x16xf32>
      %239 = arith.extui %238 : vector<16x16xi1> to vector<16x16xi32>
      %240 = arith.sitofp %239 : vector<16x16xi32> to vector<16x16xf32>
      %cst_94 = arith.constant dense<0.000000e+00> : vector<16xf32>
      %241 = vector.multi_reduction <add>, %240, %cst_94 [1] : vector<16x16xf32> to vector<16xf32>
      %242 = vector.shape_cast %241 : vector<16xf32> to vector<16x1xf32>
      %cst_95 = arith.constant dense<0.000000e+00> : vector<1xf32>
      %243 = vector.multi_reduction <add>, %242, %cst_95 [0] : vector<16x1xf32> to vector<1xf32>
      %244 = vector.shape_cast %243 : vector<1xf32> to vector<1x1xf32>
      %cst_96 = arith.constant 2.048000e+02 : f32
      %245 = vector.broadcast %cst_96 : f32 to vector<1x1xf32>
      %246 = arith.cmpf olt, %244, %245 : vector<1x1xf32>
      %247 = arith.select %246, %236, %arg9 : vector<1x1xi1>, vector<1x1xf32>
      %248 = arith.select %246, %arg10, %236 : vector<1x1xi1>, vector<1x1xf32>
      scf.yield %247, %248 : vector<1x1xf32>, vector<1x1xf32>
    }
    %cst_32 = arith.constant 5.000000e-01 : f32
    %75 = vector.broadcast %cst_32 : f32 to vector<1x1xf32>
    %76 = arith.mulf %75, %74#1 : vector<1x1xf32>
    %77 = vector.broadcast %74#1 : vector<1x1xf32> to vector<16x16xf32>
    %78 = arith.cmpf ogt, %67, %77 : vector<16x16xf32>
    %79 = arith.extui %78 : vector<16x16xi1> to vector<16x16xi32>
    %80 = arith.sitofp %79 : vector<16x16xi32> to vector<16x16xf32>
    %81 = vector.broadcast %74#1 : vector<1x1xf32> to vector<16x16xf32>
    %82 = arith.cmpf ole, %67, %81 : vector<16x16xf32>
    %83 = vector.broadcast %76 : vector<1x1xf32> to vector<16x16xf32>
    %84 = arith.cmpf oge, %67, %83 : vector<16x16xf32>
    %85 = arith.andi %82, %84 : vector<16x16xi1>
    %86 = arith.extui %85 : vector<16x16xi1> to vector<16x16xi32>
    %87 = arith.sitofp %86 : vector<16x16xi32> to vector<16x16xf32>
    %cst_33 = arith.constant 0.000000e+00 : f32
    %88 = vector.broadcast %cst_33 : f32 to vector<1x16xf32>
    %89 = vector.extract_strided_slice %80 {offsets = [0, 0], sizes = [15, 16], strides = [1, 1]} : vector<16x16xf32> to vector<15x16xf32>
    %90 = tpu.concatenate %88, %89 in 0 : vector<1x16xf32>, vector<15x16xf32> -> vector<16x16xf32>
    %cst_34 = arith.constant 0.000000e+00 : f32
    %91 = vector.broadcast %cst_34 : f32 to vector<16x1xf32>
    %92 = vector.extract_strided_slice %90 {offsets = [0, 0], sizes = [16, 15], strides = [1, 1]} : vector<16x16xf32> to vector<16x15xf32>
    %93 = tpu.concatenate %91, %92 in 1 : vector<16x1xf32>, vector<16x15xf32> -> vector<16x16xf32>
    %94 = arith.maximumf %80, %93 : vector<16x16xf32>
    %95 = arith.maximumf %94, %90 : vector<16x16xf32>
    %cst_35 = arith.constant 0.000000e+00 : f32
    %96 = vector.broadcast %cst_35 : f32 to vector<16x1xf32>
    %97 = vector.extract_strided_slice %90 {offsets = [0, 1], sizes = [16, 15], strides = [1, 1]} : vector<16x16xf32> to vector<16x15xf32>
    %98 = tpu.concatenate %97, %96 in 1 : vector<16x15xf32>, vector<16x1xf32> -> vector<16x16xf32>
    %99 = arith.maximumf %95, %98 : vector<16x16xf32>
    %cst_36 = arith.constant 0.000000e+00 : f32
    %100 = vector.broadcast %cst_36 : f32 to vector<16x1xf32>
    %101 = vector.extract_strided_slice %80 {offsets = [0, 0], sizes = [16, 15], strides = [1, 1]} : vector<16x16xf32> to vector<16x15xf32>
    %102 = tpu.concatenate %100, %101 in 1 : vector<16x1xf32>, vector<16x15xf32> -> vector<16x16xf32>
    %103 = arith.maximumf %99, %102 : vector<16x16xf32>
    %cst_37 = arith.constant 0.000000e+00 : f32
    %104 = vector.broadcast %cst_37 : f32 to vector<16x1xf32>
    %105 = vector.extract_strided_slice %80 {offsets = [0, 1], sizes = [16, 15], strides = [1, 1]} : vector<16x16xf32> to vector<16x15xf32>
    %106 = tpu.concatenate %105, %104 in 1 : vector<16x15xf32>, vector<16x1xf32> -> vector<16x16xf32>
    %107 = arith.maximumf %103, %106 : vector<16x16xf32>
    %cst_38 = arith.constant 0.000000e+00 : f32
    %108 = vector.broadcast %cst_38 : f32 to vector<1x16xf32>
    %109 = vector.extract_strided_slice %80 {offsets = [1, 0], sizes = [15, 16], strides = [1, 1]} : vector<16x16xf32> to vector<15x16xf32>
    %110 = tpu.concatenate %109, %108 in 0 : vector<15x16xf32>, vector<1x16xf32> -> vector<16x16xf32>
    %cst_39 = arith.constant 0.000000e+00 : f32
    %111 = vector.broadcast %cst_39 : f32 to vector<16x1xf32>
    %112 = vector.extract_strided_slice %110 {offsets = [0, 0], sizes = [16, 15], strides = [1, 1]} : vector<16x16xf32> to vector<16x15xf32>
    %113 = tpu.concatenate %111, %112 in 1 : vector<16x1xf32>, vector<16x15xf32> -> vector<16x16xf32>
    %114 = arith.maximumf %107, %113 : vector<16x16xf32>
    %115 = arith.maximumf %114, %110 : vector<16x16xf32>
    %cst_40 = arith.constant 0.000000e+00 : f32
    %116 = vector.broadcast %cst_40 : f32 to vector<16x1xf32>
    %117 = vector.extract_strided_slice %110 {offsets = [0, 1], sizes = [16, 15], strides = [1, 1]} : vector<16x16xf32> to vector<16x15xf32>
    %118 = tpu.concatenate %117, %116 in 1 : vector<16x15xf32>, vector<16x1xf32> -> vector<16x16xf32>
    %119 = arith.maximumf %115, %118 : vector<16x16xf32>
    %cst_41 = arith.constant 0.000000e+00 : f32
    %120 = vector.broadcast %cst_41 : f32 to vector<16x16xf32>
    %121 = arith.cmpf ogt, %119, %120 : vector<16x16xf32>
    %cst_42 = arith.constant 0.000000e+00 : f32
    %122 = vector.broadcast %cst_42 : f32 to vector<16x16xf32>
    %123 = arith.select %121, %87, %122 : vector<16x16xi1>, vector<16x16xf32>
    %124 = arith.maximumf %80, %123 : vector<16x16xf32>
    %cst_43 = arith.constant 0.000000e+00 : f32
    %125 = vector.broadcast %cst_43 : f32 to vector<1x16xf32>
    %126 = vector.extract_strided_slice %124 {offsets = [0, 0], sizes = [15, 16], strides = [1, 1]} : vector<16x16xf32> to vector<15x16xf32>
    %127 = tpu.concatenate %125, %126 in 0 : vector<1x16xf32>, vector<15x16xf32> -> vector<16x16xf32>
    %cst_44 = arith.constant 0.000000e+00 : f32
    %128 = vector.broadcast %cst_44 : f32 to vector<16x1xf32>
    %129 = vector.extract_strided_slice %127 {offsets = [0, 0], sizes = [16, 15], strides = [1, 1]} : vector<16x16xf32> to vector<16x15xf32>
    %130 = tpu.concatenate %128, %129 in 1 : vector<16x1xf32>, vector<16x15xf32> -> vector<16x16xf32>
    %131 = arith.maximumf %124, %130 : vector<16x16xf32>
    %132 = arith.maximumf %131, %127 : vector<16x16xf32>
    %cst_45 = arith.constant 0.000000e+00 : f32
    %133 = vector.broadcast %cst_45 : f32 to vector<16x1xf32>
    %134 = vector.extract_strided_slice %127 {offsets = [0, 1], sizes = [16, 15], strides = [1, 1]} : vector<16x16xf32> to vector<16x15xf32>
    %135 = tpu.concatenate %134, %133 in 1 : vector<16x15xf32>, vector<16x1xf32> -> vector<16x16xf32>
    %136 = arith.maximumf %132, %135 : vector<16x16xf32>
    %cst_46 = arith.constant 0.000000e+00 : f32
    %137 = vector.broadcast %cst_46 : f32 to vector<16x1xf32>
    %138 = vector.extract_strided_slice %124 {offsets = [0, 0], sizes = [16, 15], strides = [1, 1]} : vector<16x16xf32> to vector<16x15xf32>
    %139 = tpu.concatenate %137, %138 in 1 : vector<16x1xf32>, vector<16x15xf32> -> vector<16x16xf32>
    %140 = arith.maximumf %136, %139 : vector<16x16xf32>
    %cst_47 = arith.constant 0.000000e+00 : f32
    %141 = vector.broadcast %cst_47 : f32 to vector<16x1xf32>
    %142 = vector.extract_strided_slice %124 {offsets = [0, 1], sizes = [16, 15], strides = [1, 1]} : vector<16x16xf32> to vector<16x15xf32>
    %143 = tpu.concatenate %142, %141 in 1 : vector<16x15xf32>, vector<16x1xf32> -> vector<16x16xf32>
    %144 = arith.maximumf %140, %143 : vector<16x16xf32>
    %cst_48 = arith.constant 0.000000e+00 : f32
    %145 = vector.broadcast %cst_48 : f32 to vector<1x16xf32>
    %146 = vector.extract_strided_slice %124 {offsets = [1, 0], sizes = [15, 16], strides = [1, 1]} : vector<16x16xf32> to vector<15x16xf32>
    %147 = tpu.concatenate %146, %145 in 0 : vector<15x16xf32>, vector<1x16xf32> -> vector<16x16xf32>
    %cst_49 = arith.constant 0.000000e+00 : f32
    %148 = vector.broadcast %cst_49 : f32 to vector<16x1xf32>
    %149 = vector.extract_strided_slice %147 {offsets = [0, 0], sizes = [16, 15], strides = [1, 1]} : vector<16x16xf32> to vector<16x15xf32>
    %150 = tpu.concatenate %148, %149 in 1 : vector<16x1xf32>, vector<16x15xf32> -> vector<16x16xf32>
    %151 = arith.maximumf %144, %150 : vector<16x16xf32>
    %152 = arith.maximumf %151, %147 : vector<16x16xf32>
    %cst_50 = arith.constant 0.000000e+00 : f32
    %153 = vector.broadcast %cst_50 : f32 to vector<16x1xf32>
    %154 = vector.extract_strided_slice %147 {offsets = [0, 1], sizes = [16, 15], strides = [1, 1]} : vector<16x16xf32> to vector<16x15xf32>
    %155 = tpu.concatenate %154, %153 in 1 : vector<16x15xf32>, vector<16x1xf32> -> vector<16x16xf32>
    %156 = arith.maximumf %152, %155 : vector<16x16xf32>
    %cst_51 = arith.constant 0.000000e+00 : f32
    %157 = vector.broadcast %cst_51 : f32 to vector<16x16xf32>
    %158 = arith.cmpf ogt, %156, %157 : vector<16x16xf32>
    %cst_52 = arith.constant 0.000000e+00 : f32
    %159 = vector.broadcast %cst_52 : f32 to vector<16x16xf32>
    %160 = arith.select %158, %87, %159 : vector<16x16xi1>, vector<16x16xf32>
    %161 = arith.maximumf %124, %160 : vector<16x16xf32>
    %c0_53 = arith.constant 0 : index
    %c0_54 = arith.constant 0 : index
    %162 = vector.load %arg3[%c0_53, %c0_54] : memref<16x16xf32, #tpu.memory_space<vmem>>, vector<16x16xf32>
    %c0_55 = arith.constant 0 : index
    %c0_56 = arith.constant 0 : index
    %163 = vector.load %arg4[%c0_55, %c0_56] : memref<16x16xf32, #tpu.memory_space<vmem>>, vector<16x16xf32>
    %cst_57 = arith.constant dense<0.000000e+00> : vector<16x16xf32>
    %164 = tpu.matmul %161, %163, %cst_57 {dimension_numbers = #tpu.dot_dimension_numbers<[1], [0], [0], [1], [0, 0, 1, 1], [], []>} : vector<16x16xf32>, vector<16x16xf32>, vector<16x16xf32> -> vector<16x16xf32>
    %cst_58 = arith.constant dense<0.000000e+00> : vector<16x16xf32>
    %165 = tpu.matmul %162, %164, %cst_58 {dimension_numbers = #tpu.dot_dimension_numbers<[1], [0], [0], [1], [0, 0, 1, 1], [], []>} : vector<16x16xf32>, vector<16x16xf32>, vector<16x16xf32> -> vector<16x16xf32>
    %c0_59 = arith.constant 0 : index
    %c0_60 = arith.constant 0 : index
    %c0_61 = arith.constant 0 : index
    %166 = vector.load %arg2[%c0_59, %c0_60, %c0_61] : memref<1x4x256xf32, #tpu.memory_space<vmem>>, vector<1x4x256xf32>
    %167 = vector.shape_cast %166 : vector<1x4x256xf32> to vector<4x256xf32>
    %168 = tpu.iota {dimensions = array<i32: 0>} : vector<16x1xi32>
    %169 = arith.sitofp %168 : vector<16x1xi32> to vector<16x1xf32>
    %c0_62 = arith.constant 0 : index
    %c0_63 = arith.constant 0 : index
    %c0_64 = arith.constant 0 : index
    %170 = vector.load %arg5[%c0_62, %c0_63, %c0_64] : memref<1x16x3xf32, #tpu.memory_space<vmem>>, vector<1x16x3xf32>
    %171 = vector.shape_cast %170 : vector<1x16x3xf32> to vector<16x3xf32>
    %cst_65 = arith.constant 0.000000e+00 : f32
    %172 = vector.broadcast %cst_65 : f32 to vector<1x256xf32>
    %cst_66 = arith.constant 0.000000e+00 : f32
    %173 = vector.broadcast %cst_66 : f32 to vector<16x1xf32>
    %c0_i32_67 = arith.constant 0 : i32
    %c10_i32 = arith.constant 10 : i32
    %174 = arith.addi %c0_i32_67, %c10_i32 : i32
    %c1_i32_68 = arith.constant 1 : i32
    %175:3 = scf.for %arg8 = %c0_i32_67 to %174 step %c1_i32_68 iter_args(%arg9 = %171, %arg10 = %172, %arg11 = %173) -> (vector<16x3xf32>, vector<1x256xf32>, vector<16x1xf32>)  : i32 {
      %234 = arith.mulf %arg9, %arg9 : vector<16x3xf32>
      %cst_93 = arith.constant dense<0.000000e+00> : vector<16xf32>
      %235 = vector.multi_reduction <add>, %234, %cst_93 [1] : vector<16x3xf32> to vector<16xf32>
      %236 = vector.shape_cast %235 : vector<16xf32> to vector<16x1xf32>
      %cst_94 = arith.constant -2.000000e+00 : f32
      %237 = vector.broadcast %cst_94 : f32 to vector<16x3xf32>
      %238 = arith.mulf %237, %arg9 : vector<16x3xf32>
      %239 = tpu.concatenate %236, %238 in 1 : vector<16x1xf32>, vector<16x3xf32> -> vector<16x4xf32>
      %cst_95 = arith.constant dense<0.000000e+00> : vector<16x256xf32>
      %240 = tpu.matmul %239, %167, %cst_95 {dimension_numbers = #tpu.dot_dimension_numbers<[1], [0], [0], [1], [0, 0, 1, 1], [], []>} : vector<16x4xf32>, vector<4x256xf32>, vector<16x256xf32> -> vector<16x256xf32>
      %241 = vector.extract_strided_slice %240 {offsets = [0, 0], sizes = [1, 256], strides = [1, 1]} : vector<16x256xf32> to vector<1x256xf32>
      %cst_96 = arith.constant 0.000000e+00 : f32
      %242 = vector.broadcast %cst_96 : f32 to vector<1x256xf32>
      %243 = vector.extract_strided_slice %240 {offsets = [1, 0], sizes = [1, 256], strides = [1, 1]} : vector<16x256xf32> to vector<1x256xf32>
      %244 = arith.cmpf olt, %243, %241 : vector<1x256xf32>
      %245 = arith.select %244, %243, %241 : vector<1x256xi1>, vector<1x256xf32>
      %cst_97 = arith.constant 1.000000e+00 : f32
      %246 = vector.broadcast %cst_97 : f32 to vector<1x256xf32>
      %247 = arith.select %244, %246, %242 : vector<1x256xi1>, vector<1x256xf32>
      %248 = vector.extract_strided_slice %240 {offsets = [2, 0], sizes = [1, 256], strides = [1, 1]} : vector<16x256xf32> to vector<1x256xf32>
      %249 = arith.cmpf olt, %248, %245 : vector<1x256xf32>
      %250 = arith.select %249, %248, %245 : vector<1x256xi1>, vector<1x256xf32>
      %cst_98 = arith.constant 2.000000e+00 : f32
      %251 = vector.broadcast %cst_98 : f32 to vector<1x256xf32>
      %252 = arith.select %249, %251, %247 : vector<1x256xi1>, vector<1x256xf32>
      %253 = vector.extract_strided_slice %240 {offsets = [3, 0], sizes = [1, 256], strides = [1, 1]} : vector<16x256xf32> to vector<1x256xf32>
      %254 = arith.cmpf olt, %253, %250 : vector<1x256xf32>
      %255 = arith.select %254, %253, %250 : vector<1x256xi1>, vector<1x256xf32>
      %cst_99 = arith.constant 3.000000e+00 : f32
      %256 = vector.broadcast %cst_99 : f32 to vector<1x256xf32>
      %257 = arith.select %254, %256, %252 : vector<1x256xi1>, vector<1x256xf32>
      %258 = vector.extract_strided_slice %240 {offsets = [4, 0], sizes = [1, 256], strides = [1, 1]} : vector<16x256xf32> to vector<1x256xf32>
      %259 = arith.cmpf olt, %258, %255 : vector<1x256xf32>
      %260 = arith.select %259, %258, %255 : vector<1x256xi1>, vector<1x256xf32>
      %cst_100 = arith.constant 4.000000e+00 : f32
      %261 = vector.broadcast %cst_100 : f32 to vector<1x256xf32>
      %262 = arith.select %259, %261, %257 : vector<1x256xi1>, vector<1x256xf32>
      %263 = vector.extract_strided_slice %240 {offsets = [5, 0], sizes = [1, 256], strides = [1, 1]} : vector<16x256xf32> to vector<1x256xf32>
      %264 = arith.cmpf olt, %263, %260 : vector<1x256xf32>
      %265 = arith.select %264, %263, %260 : vector<1x256xi1>, vector<1x256xf32>
      %cst_101 = arith.constant 5.000000e+00 : f32
      %266 = vector.broadcast %cst_101 : f32 to vector<1x256xf32>
      %267 = arith.select %264, %266, %262 : vector<1x256xi1>, vector<1x256xf32>
      %268 = vector.extract_strided_slice %240 {offsets = [6, 0], sizes = [1, 256], strides = [1, 1]} : vector<16x256xf32> to vector<1x256xf32>
      %269 = arith.cmpf olt, %268, %265 : vector<1x256xf32>
      %270 = arith.select %269, %268, %265 : vector<1x256xi1>, vector<1x256xf32>
      %cst_102 = arith.constant 6.000000e+00 : f32
      %271 = vector.broadcast %cst_102 : f32 to vector<1x256xf32>
      %272 = arith.select %269, %271, %267 : vector<1x256xi1>, vector<1x256xf32>
      %273 = vector.extract_strided_slice %240 {offsets = [7, 0], sizes = [1, 256], strides = [1, 1]} : vector<16x256xf32> to vector<1x256xf32>
      %274 = arith.cmpf olt, %273, %270 : vector<1x256xf32>
      %275 = arith.select %274, %273, %270 : vector<1x256xi1>, vector<1x256xf32>
      %cst_103 = arith.constant 7.000000e+00 : f32
      %276 = vector.broadcast %cst_103 : f32 to vector<1x256xf32>
      %277 = arith.select %274, %276, %272 : vector<1x256xi1>, vector<1x256xf32>
      %278 = vector.extract_strided_slice %240 {offsets = [8, 0], sizes = [1, 256], strides = [1, 1]} : vector<16x256xf32> to vector<1x256xf32>
      %279 = arith.cmpf olt, %278, %275 : vector<1x256xf32>
      %280 = arith.select %279, %278, %275 : vector<1x256xi1>, vector<1x256xf32>
      %cst_104 = arith.constant 8.000000e+00 : f32
      %281 = vector.broadcast %cst_104 : f32 to vector<1x256xf32>
      %282 = arith.select %279, %281, %277 : vector<1x256xi1>, vector<1x256xf32>
      %283 = vector.extract_strided_slice %240 {offsets = [9, 0], sizes = [1, 256], strides = [1, 1]} : vector<16x256xf32> to vector<1x256xf32>
      %284 = arith.cmpf olt, %283, %280 : vector<1x256xf32>
      %285 = arith.select %284, %283, %280 : vector<1x256xi1>, vector<1x256xf32>
      %cst_105 = arith.constant 9.000000e+00 : f32
      %286 = vector.broadcast %cst_105 : f32 to vector<1x256xf32>
      %287 = arith.select %284, %286, %282 : vector<1x256xi1>, vector<1x256xf32>
      %288 = vector.extract_strided_slice %240 {offsets = [10, 0], sizes = [1, 256], strides = [1, 1]} : vector<16x256xf32> to vector<1x256xf32>
      %289 = arith.cmpf olt, %288, %285 : vector<1x256xf32>
      %290 = arith.select %289, %288, %285 : vector<1x256xi1>, vector<1x256xf32>
      %cst_106 = arith.constant 1.000000e+01 : f32
      %291 = vector.broadcast %cst_106 : f32 to vector<1x256xf32>
      %292 = arith.select %289, %291, %287 : vector<1x256xi1>, vector<1x256xf32>
      %293 = vector.extract_strided_slice %240 {offsets = [11, 0], sizes = [1, 256], strides = [1, 1]} : vector<16x256xf32> to vector<1x256xf32>
      %294 = arith.cmpf olt, %293, %290 : vector<1x256xf32>
      %295 = arith.select %294, %293, %290 : vector<1x256xi1>, vector<1x256xf32>
      %cst_107 = arith.constant 1.100000e+01 : f32
      %296 = vector.broadcast %cst_107 : f32 to vector<1x256xf32>
      %297 = arith.select %294, %296, %292 : vector<1x256xi1>, vector<1x256xf32>
      %298 = vector.extract_strided_slice %240 {offsets = [12, 0], sizes = [1, 256], strides = [1, 1]} : vector<16x256xf32> to vector<1x256xf32>
      %299 = arith.cmpf olt, %298, %295 : vector<1x256xf32>
      %300 = arith.select %299, %298, %295 : vector<1x256xi1>, vector<1x256xf32>
      %cst_108 = arith.constant 1.200000e+01 : f32
      %301 = vector.broadcast %cst_108 : f32 to vector<1x256xf32>
      %302 = arith.select %299, %301, %297 : vector<1x256xi1>, vector<1x256xf32>
      %303 = vector.extract_strided_slice %240 {offsets = [13, 0], sizes = [1, 256], strides = [1, 1]} : vector<16x256xf32> to vector<1x256xf32>
      %304 = arith.cmpf olt, %303, %300 : vector<1x256xf32>
      %305 = arith.select %304, %303, %300 : vector<1x256xi1>, vector<1x256xf32>
      %cst_109 = arith.constant 1.300000e+01 : f32
      %306 = vector.broadcast %cst_109 : f32 to vector<1x256xf32>
      %307 = arith.select %304, %306, %302 : vector<1x256xi1>, vector<1x256xf32>
      %308 = vector.extract_strided_slice %240 {offsets = [14, 0], sizes = [1, 256], strides = [1, 1]} : vector<16x256xf32> to vector<1x256xf32>
      %309 = arith.cmpf olt, %308, %305 : vector<1x256xf32>
      %310 = arith.select %309, %308, %305 : vector<1x256xi1>, vector<1x256xf32>
      %cst_110 = arith.constant 1.400000e+01 : f32
      %311 = vector.broadcast %cst_110 : f32 to vector<1x256xf32>
      %312 = arith.select %309, %311, %307 : vector<1x256xi1>, vector<1x256xf32>
      %313 = vector.extract_strided_slice %240 {offsets = [15, 0], sizes = [1, 256], strides = [1, 1]} : vector<16x256xf32> to vector<1x256xf32>
      %314 = arith.cmpf olt, %313, %310 : vector<1x256xf32>
      %cst_111 = arith.constant 1.500000e+01 : f32
      %315 = vector.broadcast %cst_111 : f32 to vector<1x256xf32>
      %316 = arith.select %314, %315, %312 : vector<1x256xi1>, vector<1x256xf32>
      %317 = vector.broadcast %316 : vector<1x256xf32> to vector<16x256xf32>
      %318 = vector.broadcast %169 : vector<16x1xf32> to vector<16x256xf32>
      %319 = arith.cmpf oeq, %317, %318 : vector<16x256xf32>
      %320 = arith.extui %319 : vector<16x256xi1> to vector<16x256xi32>
      %321 = arith.sitofp %320 : vector<16x256xi32> to vector<16x256xf32>
      %cst_112 = arith.constant dense<0.000000e+00> : vector<16x4xf32>
      %322 = tpu.matmul %321, %167, %cst_112 {dimension_numbers = #tpu.dot_dimension_numbers<[1], [1], [0], [0], [0, 0, 1, 0], [], []>} : vector<16x256xf32>, vector<4x256xf32>, vector<16x4xf32> -> vector<16x4xf32>
      %323 = vector.extract_strided_slice %322 {offsets = [0, 0], sizes = [16, 1], strides = [1, 1]} : vector<16x4xf32> to vector<16x1xf32>
      %324 = vector.extract_strided_slice %322 {offsets = [0, 1], sizes = [16, 3], strides = [1, 1]} : vector<16x4xf32> to vector<16x3xf32>
      %cst_113 = arith.constant 0.000000e+00 : f32
      %325 = vector.broadcast %cst_113 : f32 to vector<16x1xf32>
      %326 = arith.cmpf ogt, %323, %325 : vector<16x1xf32>
      %cst_114 = arith.constant 1.000000e+00 : f32
      %327 = vector.broadcast %cst_114 : f32 to vector<16x1xf32>
      %328 = arith.maximumf %323, %327 : vector<16x1xf32>
      %329 = vector.broadcast %328 : vector<16x1xf32> to vector<16x3xf32>
      %330 = arith.divf %324, %329 : vector<16x3xf32>
      %331 = vector.shape_cast %326 : vector<16x1xi1> to vector<16x1xi1>
      %332 = vector.broadcast %331 : vector<16x1xi1> to vector<16x3xi1>
      %333 = arith.select %332, %330, %arg9 : vector<16x3xi1>, vector<16x3xf32>
      scf.yield %333, %316, %323 : vector<16x3xf32>, vector<1x256xf32>, vector<16x1xf32>
    }
    %cst_69 = arith.constant 3.906250e-03 : f32
    %176 = vector.broadcast %cst_69 : f32 to vector<16x1xf32>
    %177 = arith.mulf %175#2, %176 : vector<16x1xf32>
    %cst_70 = arith.constant 9.99999971E-10 : f32
    %178 = vector.broadcast %cst_70 : f32 to vector<16x1xf32>
    %179 = arith.addf %177, %178 : vector<16x1xf32>
    %180 = math.log %179 : vector<16x1xf32>
    %cst_71 = arith.constant 0.000000e+00 : f32
    %181 = vector.broadcast %cst_71 : f32 to vector<16x1xf32>
    %182 = arith.subf %181, %180 : vector<16x1xf32>
    %183 = vector.broadcast %175#1 : vector<1x256xf32> to vector<16x256xf32>
    %184 = vector.broadcast %169 : vector<16x1xf32> to vector<16x256xf32>
    %185 = arith.cmpf oeq, %183, %184 : vector<16x256xf32>
    %186 = arith.extui %185 : vector<16x256xi1> to vector<16x256xi32>
    %187 = arith.sitofp %186 : vector<16x256xi32> to vector<16x256xf32>
    %188 = vector.broadcast %182 : vector<16x1xf32> to vector<16x256xf32>
    %189 = arith.mulf %187, %188 : vector<16x256xf32>
    %cst_72 = arith.constant dense<0.000000e+00> : vector<256xf32>
    %190 = vector.multi_reduction <add>, %189, %cst_72 [0] : vector<16x256xf32> to vector<256xf32>
    %191 = vector.shape_cast %190 : vector<256xf32> to vector<1x256xf32>
    %cst_73 = arith.constant dense<0x7F800000> : vector<16xf32>
    %192 = vector.multi_reduction <minimumf>, %165, %cst_73 [1] : vector<16x16xf32> to vector<16xf32>
    %193 = vector.shape_cast %192 : vector<16xf32> to vector<16x1xf32>
    %cst_74 = arith.constant dense<0x7F800000> : vector<1xf32>
    %194 = vector.multi_reduction <minimumf>, %193, %cst_74 [0] : vector<16x1xf32> to vector<1xf32>
    %195 = vector.shape_cast %194 : vector<1xf32> to vector<1x1xf32>
    %cst_75 = arith.constant dense<0xFF800000> : vector<16xf32>
    %196 = vector.multi_reduction <maximumf>, %165, %cst_75 [1] : vector<16x16xf32> to vector<16xf32>
    %197 = vector.shape_cast %196 : vector<16xf32> to vector<16x1xf32>
    %cst_76 = arith.constant dense<0xFF800000> : vector<1xf32>
    %198 = vector.multi_reduction <maximumf>, %197, %cst_76 [0] : vector<16x1xf32> to vector<1xf32>
    %199 = vector.shape_cast %198 : vector<1xf32> to vector<1x1xf32>
    %200 = arith.subf %199, %195 : vector<1x1xf32>
    %cst_77 = arith.constant 0.000000e+00 : f32
    %201 = vector.broadcast %cst_77 : f32 to vector<1x1xf32>
    %202 = arith.cmpf oeq, %200, %201 : vector<1x1xf32>
    %cst_78 = arith.constant 1.000000e+00 : f32
    %203 = vector.broadcast %cst_78 : f32 to vector<1x1xf32>
    %204 = arith.select %202, %203, %200 : vector<1x1xi1>, vector<1x1xf32>
    %205 = vector.broadcast %195 : vector<1x1xf32> to vector<16x16xf32>
    %206 = arith.subf %165, %205 : vector<16x16xf32>
    %cst_79 = arith.constant 1.000000e+00 : f32
    %207 = vector.broadcast %cst_79 : f32 to vector<1x1xf32>
    %208 = arith.divf %207, %204 : vector<1x1xf32>
    %209 = vector.broadcast %208 : vector<1x1xf32> to vector<16x16xf32>
    %210 = arith.mulf %206, %209 : vector<16x16xf32>
    %211 = vector.shape_cast %210 : vector<16x16xf32> to vector<1x16x16xf32>
    %c0_80 = arith.constant 0 : index
    %c0_81 = arith.constant 0 : index
    %c0_82 = arith.constant 0 : index
    %212 = vector.load %arg6[%c0_80, %c0_81, %c0_82] : memref<1x16x16xf32, #tpu.memory_space<vmem>>, vector<1x16x16xf32>
    tpu.vector_store %arg6[%c0_80, %c0_81, %c0_82], %211 {strides = array<i32>} : memref<1x16x16xf32, #tpu.memory_space<vmem>>, vector<1x16x16xf32>,
    %cst_83 = arith.constant dense<0x7F800000> : vector<1xf32>
    %213 = vector.multi_reduction <minimumf>, %191, %cst_83 [1] : vector<1x256xf32> to vector<1xf32>
    %214 = vector.shape_cast %213 : vector<1xf32> to vector<1x1xf32>
    %cst_84 = arith.constant dense<0x7F800000> : vector<1xf32>
    %215 = vector.multi_reduction <minimumf>, %214, %cst_84 [0] : vector<1x1xf32> to vector<1xf32>
    %216 = vector.shape_cast %215 : vector<1xf32> to vector<1x1xf32>
    %cst_85 = arith.constant dense<0xFF800000> : vector<1xf32>
    %217 = vector.multi_reduction <maximumf>, %191, %cst_85 [1] : vector<1x256xf32> to vector<1xf32>
    %218 = vector.shape_cast %217 : vector<1xf32> to vector<1x1xf32>
    %cst_86 = arith.constant dense<0xFF800000> : vector<1xf32>
    %219 = vector.multi_reduction <maximumf>, %218, %cst_86 [0] : vector<1x1xf32> to vector<1xf32>
    %220 = vector.shape_cast %219 : vector<1xf32> to vector<1x1xf32>
    %221 = arith.subf %220, %216 : vector<1x1xf32>
    %cst_87 = arith.constant 0.000000e+00 : f32
    %222 = vector.broadcast %cst_87 : f32 to vector<1x1xf32>
    %223 = arith.cmpf oeq, %221, %222 : vector<1x1xf32>
    %cst_88 = arith.constant 1.000000e+00 : f32
    %224 = vector.broadcast %cst_88 : f32 to vector<1x1xf32>
    %225 = arith.select %223, %224, %221 : vector<1x1xi1>, vector<1x1xf32>
    %226 = vector.broadcast %216 : vector<1x1xf32> to vector<1x256xf32>
    %227 = arith.subf %191, %226 : vector<1x256xf32>
    %cst_89 = arith.constant 1.000000e+00 : f32
    %228 = vector.broadcast %cst_89 : f32 to vector<1x1xf32>
    %229 = arith.divf %228, %225 : vector<1x1xf32>
    %230 = vector.broadcast %229 : vector<1x1xf32> to vector<1x256xf32>
    %231 = arith.mulf %227, %230 : vector<1x256xf32>
    %232 = vector.shape_cast %231 : vector<1x256xf32> to vector<1x1x256xf32>
    %c0_90 = arith.constant 0 : index
    %c0_91 = arith.constant 0 : index
    %c0_92 = arith.constant 0 : index
    %233 = vector.load %arg7[%c0_90, %c0_91, %c0_92] : memref<1x1x256xf32, #tpu.memory_space<vmem>>, vector<1x1x256xf32>
    tpu.vector_store %arg7[%c0_90, %c0_91, %c0_92], %232 {strides = array<i32>} : memref<1x1x256xf32, #tpu.memory_space<vmem>>, vector<1x1x256xf32>,
    return
  }
  func.func @transform_0(%arg0: i32) -> (i32, i32, i32, i32) {
    %c0_i32 = arith.constant 0 : i32
    %c0_i32_0 = arith.constant 0 : i32
    %c0_i32_1 = arith.constant 0 : i32
    %c0_i32_2 = arith.constant 0 : i32
    return %arg0, %c0_i32, %c0_i32_0, %c0_i32_1 : i32, i32, i32, i32
  }
  func.func @transform_1(%arg0: i32) -> (i32, i32, i32) {
    %c0_i32 = arith.constant 0 : i32
    %c0_i32_0 = arith.constant 0 : i32
    %c0_i32_1 = arith.constant 0 : i32
    return %arg0, %c0_i32, %c0_i32_0 : i32, i32, i32
  }
  func.func @transform_2(%arg0: i32) -> (i32, i32) {
    %c0_i32 = arith.constant 0 : i32
    %c0_i32_0 = arith.constant 0 : i32
    %c0_i32_1 = arith.constant 0 : i32
    return %c0_i32, %c0_i32_0 : i32, i32
  }
  func.func @transform_3(%arg0: i32) -> (i32, i32) {
    %c0_i32 = arith.constant 0 : i32
    %c0_i32_0 = arith.constant 0 : i32
    %c0_i32_1 = arith.constant 0 : i32
    return %c0_i32, %c0_i32_0 : i32, i32
  }
  func.func @transform_4(%arg0: i32) -> (i32, i32, i32) {
    %c0_i32 = arith.constant 0 : i32
    %c0_i32_0 = arith.constant 0 : i32
    %c0_i32_1 = arith.constant 0 : i32
    return %arg0, %c0_i32, %c0_i32_0 : i32, i32, i32
  }
  func.func @transform_5(%arg0: i32) -> (i32, i32, i32) {
    %c0_i32 = arith.constant 0 : i32
    %c0_i32_0 = arith.constant 0 : i32
    %c0_i32_1 = arith.constant 0 : i32
    return %arg0, %c0_i32, %c0_i32_0 : i32, i32, i32
  }
  func.func @transform_6(%arg0: i32) -> (i32, i32, i32) {
    %c0_i32 = arith.constant 0 : i32
    %c0_i32_0 = arith.constant 0 : i32
    %c0_i32_1 = arith.constant 0 : i32
    return %arg0, %c0_i32, %c0_i32_0 : i32, i32, i32
  }
}

</mosaic_0001>

<bundles_post_ra>
// kernel: salient_region_detector.1
= control target key start
LH: loop header
LB: loop body
LE: loop exit
PB: predicated region body
PF: predicated region fallthrough
CT: control target
= control target key end

     0   :  { %s1966_s21 = smov 0   ;;  %s2342_s0 = inlined_call_operand.vmem [shape: f32[2,3,16,16], index: 0, kind: input, shape index: {}]   ;;  %s2343_s1 = inlined_call_operand.vmem [shape: f32[2,4,256], index: 1, kind: input, shape index: {}]   ;;  %s2344_s2 = inlined_call_operand.vmem [shape: f32[16,16], index: 2, kind: input, shape index: {}, may-alias: {2,3}]   ;;  %s2345_s3 = inlined_call_operand.vmem [shape: f32[16,16], index: 3, kind: input, shape index: {}, may-alias: {2,3}]   ;;  %s2346_s4 = inlined_call_operand.vmem [shape: f32[2,16,3], index: 4, kind: input, shape index: {}]   ;;  %s2347_s5 = inlined_call_operand.vmem [shape: f32[2,16,16], index: 5, kind: output, shape index: {0}]   ;;  %s2348_s6 = inlined_call_operand.vmem [shape: f32[2,1,256], index: 6, kind: output, shape index: {1}]  }
   0x1 LB: > { %s1639_s22 = sadd.s32 4294967295, %s1894_s21   ;;  %p1643_p0 = scmp.ge.s32.totalorder %s1894_s21, 1  ;;  %s1894_s21 = sphi %s1966_s21, %s17_s21  }
   0x2   : > { %p235_p1 = scmp.lt.s32.totalorder %s1894_s21, 3 }
   0x4   : > { %p236_p2 = pnand %p1643_p0, %p235_p1 }
   0x5   : > { %p279_p3 = scmp.lt.s32.totalorder (!%p236_p2), %s1639_s22, 1  ;;  %vm323_vm0 = vcmask (!%p236_p2), 1040384   ;;  %s1920_s18 = smov (!%p236_p2), 127   ;;  %vm334_vm1 = vcmask (!%p236_p2), 1046528   ;;  %vm362_vm2 = vcmask (!%p236_p2), 121856   ;;  %vm351_vm3 = vcmask (!%p236_p2), 7168  }
   0x6   : > { %239 = sbr.rel (%p236_p2) target bundleno = 2334 (0x91e), region = 40  ;;  %s1921_s19 = smov (!%p236_p2), 1   ;;  %vm425_vm5 = vcmask (!%p236_p2), 130048  }
   0x7   : > { %s2029_s20 = smov (!%p236_p2), 0  }
   0xd   : > { %s2359_s22 = smov (!%p279_p3, %s1639_s22), 1 }
   0xe   : > { %s1717_s23 = smul.u32 48, %s2359_s22  ;;  %s1684_s24 = sshll.u32 %s2359_s22, 3 }
   0xf   : > { %s1977_s27 = scalar_lea.vmem %s2343_s1, %s1684_s24  ;;  %s1685_s28 = sshll.u32 %s2359_s22, 4 }
  0x10   : > { %s283_s7 = scalar_lea.vmem %s2342_s0, %s1717_s23  ;;  %s1985_s10 = scalar_lea.vmem %s2346_s4, %s1685_s28 }
  0x11   : > { %s1990_s13 = scalar_lea.vmem %s2347_s5, %s1685_s28  ;;  %s1651_s14 = sshll.u32 %s2359_s22, 1  ;;  %v303_v0 = vld [vmem:[%s283_s7] sm:$0xff]  ;;  %v1652_v1 = vld [vmem:[%s283_s7 + $0x10] sm:$0xff]  ;;  %v304_v6 = vld [vmem:[%s283_s7 + $0x8] sm:$0xff] }
  0x12   : > { %v1654_v2 = vld [vmem:[%s283_s7 + $0x20] sm:$0xff]  ;;  %s1995_s17 = scalar_lea.vmem %s2348_s6, %s1651_s14  ;;  %v311_v3 = vmul.f32 0.299, %v303_v0  ;;  %v313_v4 = vmul.f32 0.587, %v1652_v1  ;;  %v1653_v7 = vld [vmem:[%s283_s7 + $0x18] sm:$0xff] }
  0x13   : > { %v317_v5 = vmul.f32 0.114, %v1654_v2  ;;  %v1655_v8 = vld [vmem:[%s283_s7 + $0x28] sm:$0xff]  ;;  %v312_v10 = vmul.f32 0.299, %v304_v6 }
  0x14   : > { %v315_v9 = vadd.f32 %v313_v4, %v311_v3  ;;  %v314_v11 = vmul.f32 0.587, %v1653_v7  ;;  %v318_v12 = vmul.f32 0.114, %v1655_v8 }
  0x16   : > { %v319_v13 = vadd.f32 %v317_v5, %v315_v9  ;;  %v316_v14 = vadd.f32 %v314_v11, %v312_v10 }
  0x18   : > { %377 = vrot.lane.b32.xlu1 %v319_v13, %s1920_s18  ;;  %367 = vrot.lane.b32.xlu0 %v319_v13, %s1921_s19  ;;  %v320_v15 = vadd.f32 %v318_v12, %v316_v14  ;;  %v324_v16 = vrot.slane %v319_v13, 7  ;;  %v330_v17 = vmul.f32 2.0, %v319_v13  ;;  %v335_v18 = vrot.slane %v319_v13, 1 }
  0x1a   : > { %v329_v19 = vsel %vm323_vm0, 0.0, %v324_v16  ;;  %v336_v20 = vrot.slane %v320_v15, 1  ;;  %v325_v21 = vrot.slane %v320_v15, 7  ;;  %v331_v22 = vmul.f32 2.0, %v320_v15 }
  0x1b   : > { %v332_v23 = vadd.f32 %v330_v17, %v329_v19 }
  0x1c   : > { %379 = vrot.lane.b32.xlu1 %v320_v15, %s1920_s18  ;;  %369 = vrot.lane.b32.xlu0 %v320_v15, %s1921_s19  ;;  %v337_v24 = vsel %vm334_vm1, %v335_v18, %v336_v20  ;;  %v326_v25 = vsel %vm323_vm0, %v324_v16, %v325_v21  ;;  %v340_v26 = vsel %vm334_vm1, %v336_v20, 0.0 }
  0x1d   : > { %v341_v27 = vadd.f32 %v337_v24, %v332_v23  ;;  %v333_v28 = vadd.f32 %v331_v22, %v326_v25 }
  0x1f   : > { %v342_v29 = vadd.f32 %v340_v26, %v333_v28 }
  0x20   : > { %345 = vrot.lane.b32.xlu0 %v341_v27, %s1921_s19 }
  0x21   : > { %347 = vrot.lane.b32.xlu1 %v342_v29, %s1921_s19 }
  0x24   : > { %356 = vrot.lane.b32.xlu0 %v341_v27, %s1920_s18 }
  0x25   : > { %358 = vrot.lane.b32.xlu1 %v342_v29, %s1920_s18 }
  0x8a   : > { %v378_v30 = vpop.permute.xlu1 %377  ;;  %v368_v31 = vpop.permute.xlu0 %367 }
  0x8b   : > { %v383_v32 = vsel %vm362_vm2, %v378_v30, 0.0  ;;  %v373_v33 = vsel %vm351_vm3, 0.0, %v368_v31  ;;  %v1900_v30 = vmov 0.0  }
  0x8c   : > { %v375_v34 = vadd.f32 %v373_v33, %v330_v17 }
  0x8e   : > { %v385_v35 = vadd.f32 %v383_v32, %v375_v34  ;;  %v380_v36 = vpop.permute.xlu1 %379  ;;  %v370_v37 = vpop.permute.xlu0 %369 }
  0x8f   : > { %v384_v38 = vsel %vm362_vm2, %v380_v36, 0.0  ;;  %v374_v39 = vsel %vm351_vm3, 0.0, %v370_v37 }
  0x90   : > { %v389_v40 = vrot.slane %v385_v35, 7  ;;  %v376_v41 = vadd.f32 %v374_v39, %v331_v22  ;;  %v397_v45 = vrot.slane %v385_v35, 1 }
  0x92   : > { %v394_v42 = vsel %vm323_vm0, 0.0, %v389_v40  ;;  %v386_v43 = vadd.f32 %v384_v38, %v376_v41  ;;  %v346_v44 = vpop.permute.xlu0 %345 }
  0x93   : > { %v352_v46 = vsel %vm351_vm3, 0.0, %v346_v44  ;;  %v348_v47 = vpop.permute.xlu1 %347  ;;  %v395_v52 = vmul.f32 -1.0, %v394_v42 }
  0x94   : > { %v390_v48 = vrot.slane %v386_v43, 7  ;;  %v398_v49 = vrot.slane %v386_v43, 1  ;;  %v354_v50 = vmul.f32 -1.0, %v352_v46  ;;  %v353_v51 = vsel %vm351_vm3, 0.0, %v348_v47 }
  0x95   : > { %v355_v53 = vmul.f32 -1.0, %v353_v51 }
  0x96   : > { %v399_v54 = vsel %vm334_vm1, %v397_v45, %v398_v49  ;;  %v357_v55 = vpop.permute.xlu0 %356  ;;  %v391_v56 = vsel %vm323_vm0, %v389_v40, %v390_v48  ;;  %v402_v62 = vsel %vm334_vm1, %v398_v49, 0.0 }
  0x97   : > { %v403_v57 = vadd.f32 %v399_v54, %v395_v52  ;;  %v363_v58 = vsel %vm362_vm2, %v357_v55, 0.0  ;;  %v396_v59 = vmul.f32 -1.0, %v391_v56  ;;  %v359_v60 = vpop.permute.xlu1 %358 }
  0x98   : > { %v365_v61 = vadd.f32 %v363_v58, %v354_v50  ;;  %v364_v63 = vsel %vm362_vm2, %v359_v60, 0.0 }
  0x99   : > { %v407_v0 = vmul.f32 %v403_v57, %v403_v57  ;;  %v404_v1 = vadd.f32 %v402_v62, %v396_v59  ;;  %v366_v2 = vadd.f32 %v364_v63, %v355_v53 }
  0x9a   : > { %v405_v3 = vmul.f32 %v365_v61, %v365_v61 }
  0x9b   : > { %v408_v4 = vmul.f32 %v404_v1, %v404_v1  ;;  %v406_v5 = vmul.f32 %v366_v2, %v366_v2 }
  0x9c   : > { %v409_v6 = vadd.f32 %v407_v0, %v405_v3 }
  0x9d   : > { %v410_v7 = vadd.f32 %v408_v4, %v406_v5 }
  0x9e   : > { %1785 = vrsqrt.f32 %v409_v6  ;;  %vm413_vm4 = vcmp.eq.f32.partialorder %v409_v6, inf  ;;  %v416_v11 = vand.u32 2147483648, %v409_v6  ;;  %vm415_vm6 = vcmp.eq.f32.partialorder %v409_v6, 0.0 }
  0x9f   : > { %1787 = vrsqrt.f32 %v410_v7  ;;  %vm420_vm7 = vcmp.eq.f32.partialorder %v410_v7, inf  ;;  %v423_v14 = vand.u32 2147483648, %v410_v7  ;;  %vm422_vm8 = vcmp.eq.f32.partialorder %v410_v7, 0.0 }
  0xa8   : > { %v1786_v8 = vpop.eup %1785 }
  0xa9   : > { %v1788_v9 = vpop.eup %1787  ;;  %v412_v10 = vmul.f32 %v1786_v8, %v409_v6 }
  0xaa   : > { %v419_v12 = vmul.f32 %v1788_v9, %v410_v7 }
  0xab   : > { %v414_v13 = vsel %vm413_vm4, %v409_v6, %v412_v10 }
  0xac   : > { %v2021_v15 = vsel %vm415_vm6, %v416_v11, %v414_v13  ;;  %v421_v16 = vsel %vm420_vm7, %v410_v7, %v419_v12 }
  0xad   : > { %v426_v17 = vsel %vm425_vm5, %v2021_v15, -inf  ;;  %v2025_v18 = vsel %vm422_vm8, %v423_v14, %v421_v16 }
  0xae   : > { %427 = vmax.xlane.f32.xlu0 %v426_v17  ;;  %v429_v19 = vsel %vm425_vm5, %v2025_v18, -inf }
  0xaf   : > { %430 = vmax.xlane.f32.xlu1 %v429_v19 }
 0x13b   : > { %v428_v20 = vpop.xlane.xlu0 %427 }
 0x13c   : > { %v431_v21 = vpop.xlane.xlu1 %430 }
 0x13d   : > { %v432_v22 = vmax.f32 %v428_v20, %v431_v21 }
 0x13f   : > { %v433_v23 = vrot.slane %v432_v22, 4 }
 0x141   : > { %v434_v24 = vmax.f32 %v432_v22, %v433_v23 }
 0x143   : > { %v435_v25 = vrot.slane %v434_v24, 2 }
 0x145   : > { %v436_v26 = vmax.f32 %v434_v24, %v435_v25 }
 0x147   : > { %v437_v27 = vrot.slane %v436_v26, 1 }
 0x149   : > { %v438_v28 = vmax.f32 %v436_v26, %v437_v27  }
 0x14b   : > { %v1896_v29 = vmov %v438_v28  }
 0x14c LB: >> { %v447_v31 = vadd.f32 %v1898_v29, %v1902_v30  ;;  %v1922_v33 = vmov 0.0   ;;  %s444_s20 = sadd.s32 1, %s1906_s20   ;;  %s1906_s20 = sphi %s2029_s20, %s444_s20   ;;  %v1902_v30 = vphi %v1900_v30, %v469_v30   ;;  %v1898_v29 = vphi %v1896_v29, %v1897_v29  }
 0x14d   : >> { %p441_p4 = scmp.ge.s32.totalorder %s444_s20, 24  }
 0x14e   : >> { %v448_v32 = vmul.f32 0.5, %v447_v31  ;;  %v1923_v48 = vmov (%p441_p4), 0.0   ;;  %s2173_s7 = smov (%p441_p4), 0  }
 0x150   : >> { %vm449_vm9 = vcmp.le.f32.partialorder %v2021_v15, %v448_v32  ;;  %vm450_vm10 = vcmp.le.f32.partialorder %v2025_v18, %v448_v32 }
 0x151   : >> { %v1656_v34 = vsel %vm449_vm9, 1.0, %v1922_v33  ;;  %v1657_v35 = vsel %vm450_vm10, 1.0, %v1922_v33 }
 0x152   : >> { %v455_v36 = vsel %vm425_vm5, %v1656_v34, 0.0  ;;  %v458_v37 = vsel %vm425_vm5, %v1657_v35, 0.0 }
 0x153   : >> { %456 = vadd.xlane.f32.xlu0 %v455_v36 }
 0x157   : >> { %459 = vadd.xlane.f32.xlu0 %v458_v37 }
 0x1e0   : >> { %v457_v38 = vpop.xlane.xlu0 %456 }
 0x1e4   : >> { %v460_v39 = vpop.xlane.xlu0 %459 }
 0x1e5   : >> { %v461_v40 = vadd.f32 %v460_v39, %v457_v38 }
 0x1e7   : >> { %v462_v41 = vrot.slane %v461_v40, 4 }
 0x1e9   : >> { %v463_v42 = vadd.f32 %v462_v41, %v461_v40 }
 0x1eb   : >> { %v464_v43 = vrot.slane %v463_v42, 2 }
 0x1ed   : >> { %v465_v44 = vadd.f32 %v464_v43, %v463_v42 }
 0x1ef   : >> { %v466_v45 = vrot.slane %v465_v44, 1 }
 0x1f0   : > { %443 = sbr.rel (!%p441_p4) target bundleno = 332 (0x14c), region = 104 }
 0x1f1   : >> { %v467_v46 = vadd.f32 %v466_v45, %v465_v44 }
 0x1f3   : >> { %vm468_vm11 = vcmp.lt.f32.partialorder %v467_v46, 204.8 }
 0x1f4   : >> { %v469_v30 = vsel %vm468_vm11, %v448_v32, %v1902_v30   ;;  %v2036_v29 = vsel %vm468_vm11, %v1898_v29, %v448_v32  }
 0x1f5   : >> { %v2349_v47 = vmov %v2036_v29 }
 0x1f6   : >> { %v1897_v29 = vmov %v2349_v47   ;;  %vm472_vm12 = vcmp.gt.f32.partialorder (%p441_p4), %v2021_v15, %v2349_v47  ;;  %vm473_vm13 = vcmp.gt.f32.partialorder (%p441_p4), %v2025_v18, %v2349_v47  ;;  %v471_v17 = vmul.f32 (%p441_p4), 0.5, %v2349_v47 }
 0x1f7   : > { %v2046_v49 = vsel %vm472_vm12, 1.0, %v1923_v48  ;;  %v2049_v50 = vsel %vm473_vm13, 1.0, %v1923_v48  ;;  %vm478_vm14 = vcmp.le.f32.partialorder %v2021_v15, %v2349_v47  ;;  %vm479_vm4 = vcmp.le.f32.partialorder %v2025_v18, %v2349_v47 }
 0x1f8   : > { %v490_v51 = vrot.slane %v2046_v49, 7  ;;  %v491_v52 = vrot.slane %v2049_v50, 7  ;;  %v1799_v53 = vpack.i.bf16 %v2049_v50, %v2046_v49  ;;  %v539_v54 = vrot.slane %v2046_v49, 1 }
 0x1f9   : > { %v540_v55 = vrot.slane %v2049_v50, 1  ;;  %vm480_vm15 = vcmp.ge.f32.partialorder %v2021_v15, %v471_v17  ;;  %vm481_vm6 = vcmp.ge.f32.partialorder %v2025_v18, %v471_v17 }
 0x1fa   : > { %v492_v56 = vsel %vm323_vm0, %v490_v51, %v491_v52  ;;  %v495_v57 = vsel %vm323_vm0, 0.0, %v490_v51  ;;  %1800 = vrot.lane.b32.xlu1 %v1799_v53, %s1921_s19  ;;  %vm482_vm7 = vmand %vm478_vm14, %vm480_vm15 }
 0x1fb   : > { %v1789_v58 = vpack.i.bf16 %v492_v56, %v495_v57  ;;  %v541_v59 = vsel %vm334_vm1, %v539_v54, %v540_v55  ;;  %v544_v60 = vsel %vm334_vm1, %v540_v55, 0.0  ;;  %vm483_vm8 = vmand %vm479_vm4, %vm481_vm6  ;;  %v2089_v44 = vsel %vm482_vm7, 1.0, %v1923_v48 }
 0x1fc   : > { %v1814_v61 = vpack.i.bf16 %v544_v60, %v541_v59  ;;  %v2092_v45 = vsel %vm483_vm8, 1.0, %v1923_v48 }
 0x1fd   : > { %1790 = vrot.lane.b32.xlu0 %v1789_v58, %s1921_s19 }
 0x1fe   : > { %1805 = vrot.lane.b32.xlu1 %v1799_v53, %s1920_s18 }
 0x201   : > { %1795 = vrot.lane.b32.xlu0 %v1789_v58, %s1920_s18 }
 0x202   : > { %1815 = vrot.lane.b32.xlu1 %v1814_v61, %s1920_s18 }
 0x205   : > { %1810 = vrot.lane.b32.xlu0 %v1814_v61, %s1921_s19 }
 0x26c   : > { %v1801_v62 = vpop.permute.xlu1 %1800 }
 0x26d   : > { %v1803_v7 = vunpack.i.h.bf16 %v1801_v62  ;;  %v1802_v8 = vunpack.i.l.bf16 %v1801_v62  ;;  %v662_v62 = vld [vmem:[%s2345_s3] sm:$0xff] }
 0x26f   : > { %v1791_v63 = vpop.permute.xlu0 %1790  ;;  %v526_v21 = vsel %vm351_vm3, 0.0, %v1803_v7  ;;  %v525_v22 = vsel %vm351_vm3, 0.0, %v1802_v8 }
 0x270   : > { %v1793_v0 = vunpack.i.h.bf16 %v1791_v63  ;;  %v1792_v1 = vunpack.i.l.bf16 %v1791_v63  ;;  %v1806_v2 = vpop.permute.xlu1 %1805  ;;  %v663_v63 = vld [vmem:[%s2345_s3 + $0x8] sm:$0xff] }
 0x271   : > { %v1808_v12 = vunpack.i.h.bf16 %v1806_v2  ;;  %v1807_v13 = vunpack.i.l.bf16 %v1806_v2 }
 0x272   : > { %v504_v3 = vsel %vm351_vm3, 0.0, %v1793_v0  ;;  %v503_v4 = vsel %vm351_vm3, 0.0, %v1792_v1  ;;  %v1709_v0 = vpack.c.bf16 %v663_v63, %v662_v62  ;;  %v832_v63 = vld [vmem:[%s1985_s10] sm:$0xff]  }
 0x273   : > { %v506_v5 = vmax.f32 %v2049_v50, %v504_v3  ;;  %v505_v6 = vmax.f32 %v2046_v49, %v503_v4  ;;  %v1796_v9 = vpop.permute.xlu0 %1795  ;;  %v536_v27 = vsel %vm362_vm2, %v1808_v12, 0.0  ;;  %v535_v28 = vsel %vm362_vm2, %v1807_v13, 0.0 }
 0x274   : > { %v1798_v10 = vunpack.i.h.bf16 %v1796_v9  ;;  %v1797_v11 = vunpack.i.l.bf16 %v1796_v9  ;;  %v1816_v26 = vpop.permute.xlu1 %1815  ;;  %1710 = vmatprep.subr.bf16.mxu0 %v1709_v0 }
 0x275   : > { %v507_v14 = vmax.f32 %v505_v6, %v495_v57  ;;  %v508_v16 = vmax.f32 %v506_v5, %v492_v56  ;;  %v1818_v35 = vunpack.i.h.bf16 %v1816_v26  ;;  %v1817_v36 = vunpack.i.l.bf16 %v1816_v26  ;;  %1712 = vmatpush3.bf16.msra.mxu0 %v1709_v0  ;;  %v833_v0 = vld [vmem:[%s1985_s10 + $0x8] sm:$0xff]  }
 0x276   : > { %v516_v19 = vsel %vm362_vm2, %v1798_v10, 0.0  ;;  %v515_v20 = vsel %vm362_vm2, %v1797_v11, 0.0 }
 0x277   : > { %v517_v23 = vmax.f32 %v507_v14, %v515_v20  ;;  %v518_v24 = vmax.f32 %v508_v16, %v516_v19  ;;  %v1811_v25 = vpop.permute.xlu0 %1810  ;;  %v565_v41 = vsel %vm362_vm2, %v1818_v35, 0.0  ;;  %v564_v15 = vsel %vm362_vm2, %v1817_v36, 0.0 }
 0x278   : > { %v1813_v29 = vunpack.i.h.bf16 %v1811_v25  ;;  %v1812_v30 = vunpack.i.l.bf16 %v1811_v25 }
 0x279   : > { %v527_v31 = vmax.f32 %v517_v23, %v525_v22  ;;  %v528_v32 = vmax.f32 %v518_v24, %v526_v21 }
 0x27a   : > { %v553_v33 = vsel %vm351_vm3, 0.0, %v1813_v29  ;;  %v552_v34 = vsel %vm351_vm3, 0.0, %v1812_v30 }
 0x27b   : > { %v537_v37 = vmax.f32 %v527_v31, %v535_v28  ;;  %v538_v38 = vmax.f32 %v528_v32, %v536_v27 }
 0x27d   : > { %v554_v39 = vmax.f32 %v537_v37, %v552_v34  ;;  %v555_v40 = vmax.f32 %v538_v38, %v553_v33 }
 0x27f   : > { %v556_v42 = vmax.f32 %v554_v39, %v541_v59  ;;  %v557_v43 = vmax.f32 %v555_v40, %v544_v60 }
 0x281   : > { %v566_v46 = vmax.f32 %v556_v42, %v564_v15  ;;  %v567_v47 = vmax.f32 %v557_v43, %v565_v41 }
 0x283   : > { %vm568_vm9 = vcmp.gt.f32.partialorder %v566_v46, 0.0  ;;  %vm569_vm10 = vcmp.gt.f32.partialorder %v567_v47, 0.0 }
 0x284   : > { %v570_v18 = vsel %vm568_vm9, %v2089_v44, 0.0  ;;  %v571_v51 = vsel %vm569_vm10, %v2092_v45, 0.0 }
 0x285   : > { %v2097_v52 = vmax.f32 %v2046_v49, %v570_v18  ;;  %v2100_v53 = vmax.f32 %v2049_v50, %v571_v51 }
 0x287   : > { %v576_v54 = vrot.slane %v2097_v52, 7  ;;  %v577_v55 = vrot.slane %v2100_v53, 7  ;;  %v625_v59 = vrot.slane %v2097_v52, 1  ;;  %v626_v60 = vrot.slane %v2100_v53, 1 }
 0x288   : > { %v1834_v49 = vpack.i.bf16 %v2100_v53, %v2097_v52 }
 0x289   : > { %v578_v56 = vsel %vm323_vm0, %v576_v54, %v577_v55  ;;  %v581_v57 = vsel %vm323_vm0, 0.0, %v576_v54  ;;  %v627_v50 = vsel %vm334_vm1, %v625_v59, %v626_v60  ;;  %v630_v61 = vsel %vm334_vm1, %v626_v60, 0.0  ;;  %v660_v59 = vld [vmem:[%s2344_s2] sm:$0xff] }
 0x28a   : > { %v1829_v58 = vpack.i.bf16 %v578_v56, %v581_v57  ;;  %v1844_v1 = vpack.i.bf16 %v630_v61, %v627_v50  ;;  %1706 = vmatprep.mubr.msk.f32.mxu1 %vm425_vm5, %v660_v59 }
 0x28c   : > { %1830 = vrot.lane.b32.xlu1 %v1829_v58, %s1920_s18  ;;  %1820 = vrot.lane.b32.xlu0 %v1829_v58, %s1921_s19 }
 0x290   : > { %1835 = vrot.lane.b32.xlu1 %v1834_v49, %s1920_s18  ;;  %1825 = vrot.lane.b32.xlu0 %v1834_v49, %s1921_s19 }
 0x294   : > { %1845 = vrot.lane.b32.xlu1 %v1844_v1, %s1920_s18  ;;  %1840 = vrot.lane.b32.xlu0 %v1844_v1, %s1921_s19 }
 0x2fe   : > { %v1831_v2 = vpop.permute.xlu1 %1830  ;;  %v1821_v3 = vpop.permute.xlu0 %1820 }
 0x2ff   : > { %v1823_v4 = vunpack.i.h.bf16 %v1821_v3  ;;  %v1822_v5 = vunpack.i.l.bf16 %v1821_v3  ;;  %v1833_v6 = vunpack.i.h.bf16 %v1831_v2  ;;  %v1832_v7 = vunpack.i.l.bf16 %v1831_v2 }
 0x301   : > { %v590_v8 = vsel %vm351_vm3, 0.0, %v1823_v4  ;;  %v589_v9 = vsel %vm351_vm3, 0.0, %v1822_v5  ;;  %v602_v20 = vsel %vm362_vm2, %v1833_v6, 0.0  ;;  %v601_v21 = vsel %vm362_vm2, %v1832_v7, 0.0 }
 0x302   : > { %v592_v10 = vmax.f32 %v2100_v53, %v590_v8  ;;  %v591_v11 = vmax.f32 %v2097_v52, %v589_v9  ;;  %v1836_v12 = vpop.permute.xlu1 %1835  ;;  %v1826_v13 = vpop.permute.xlu0 %1825 }
 0x303   : > { %v1828_v14 = vunpack.i.h.bf16 %v1826_v13  ;;  %v1827_v16 = vunpack.i.l.bf16 %v1826_v13  ;;  %v1838_v22 = vunpack.i.h.bf16 %v1836_v12  ;;  %v1837_v23 = vunpack.i.l.bf16 %v1836_v12 }
 0x304   : > { %v594_v17 = vmax.f32 %v592_v10, %v578_v56  ;;  %v593_v19 = vmax.f32 %v591_v11, %v581_v57 }
 0x305   : > { %v612_v27 = vsel %vm351_vm3, 0.0, %v1828_v14  ;;  %v611_v28 = vsel %vm351_vm3, 0.0, %v1827_v16  ;;  %v622_v34 = vsel %vm362_vm2, %v1838_v22, 0.0  ;;  %v621_v35 = vsel %vm362_vm2, %v1837_v23, 0.0 }
 0x306   : > { %v603_v24 = vmax.f32 %v593_v19, %v601_v21  ;;  %v604_v25 = vmax.f32 %v594_v17, %v602_v20  ;;  %v1841_v26 = vpop.permute.xlu0 %1840  ;;  %v1846_v33 = vpop.permute.xlu1 %1845 }
 0x307   : > { %v1843_v29 = vunpack.i.h.bf16 %v1841_v26  ;;  %v1842_v30 = vunpack.i.l.bf16 %v1841_v26  ;;  %v1848_v38 = vunpack.i.h.bf16 %v1846_v33  ;;  %v1847_v39 = vunpack.i.l.bf16 %v1846_v33 }
 0x308   : > { %v613_v31 = vmax.f32 %v603_v24, %v611_v28  ;;  %v614_v32 = vmax.f32 %v604_v25, %v612_v27 }
 0x309   : > { %v639_v40 = vsel %vm351_vm3, 0.0, %v1843_v29  ;;  %v638_v41 = vsel %vm351_vm3, 0.0, %v1842_v30  ;;  %v651_v47 = vsel %vm362_vm2, %v1848_v38, 0.0  ;;  %v650_v18 = vsel %vm362_vm2, %v1847_v39, 0.0 }
 0x30a   : > { %v623_v36 = vmax.f32 %v613_v31, %v621_v35  ;;  %v624_v37 = vmax.f32 %v614_v32, %v622_v34 }
 0x30c   : > { %v640_v15 = vmax.f32 %v623_v36, %v638_v41  ;;  %v641_v42 = vmax.f32 %v624_v37, %v639_v40 }
 0x30e   : > { %v642_v43 = vmax.f32 %v640_v15, %v627_v50  ;;  %v643_v46 = vmax.f32 %v641_v42, %v630_v61  ;;  %v2159_v61 = vld [vmem:[%s1977_s27] sm:$0xff] }
 0x310   : > { %v653_v51 = vmax.f32 %v643_v46, %v651_v47  ;;  %v652_v54 = vmax.f32 %v642_v43, %v650_v18 }
 0x312   : > { %vm654_vm0 = vcmp.gt.f32.partialorder %v652_v54, 0.0  ;;  %vm655_vm1 = vcmp.gt.f32.partialorder %v653_v51, 0.0 }
 0x313   : > { %v656_v55 = vsel %vm654_vm0, %v2089_v44, 0.0  ;;  %v657_v56 = vsel %vm655_vm1, %v2092_v45, 0.0 }
 0x314   : > { %v658_v57 = vmax.f32 %v2097_v52, %v656_v55  ;;  %v659_v58 = vmax.f32 %v2100_v53, %v657_v56  ;;  %v661_v52 = vld [vmem:[%s2344_s2 + $0x8] sm:$0xff]  ;;  %v827_v53 = vlaneseq }
 0x316   : > { %1699 = vmatprep.mubr.msk.f32.mxu0 %vm425_vm5, %v658_v57  ;;  %v2153_v49 = vshrl.u32 %v827_v53, 7 }
 0x317   : > { %1700 = vmatmul.mubr.msk.f32.vlgmr.msra.gmra.mrb[0].mxu0 %vm425_vm5, %v659_v58 }
 0x318   : > { %v2156_v50 = vadd.s32 8, %v2153_v49  ;;  %v830_v62 = vcvt.s32.f32 %v2153_v49 }
 0x31a   : > { %v831_v1 = vcvt.s32.f32 %v2156_v50 }
 0x3ea   : > { %v1701_v44 = vpop.f32.mrb[0].mxu0 }
 0x3eb   : > { %v736_v60 = vpop.f32.mrb[1].mxu0 }
 0x3ec   : > { %v1713_v45 = vpack.c.bf16 %v1701_v44, %v736_v60 }
 0x3ee   : > { %1714 = vmatprep.subr.bf16.mxu1 %v1713_v45 }
 0x3ef   : > { %1716 = vmatpush3.bf16.msra.mxu1 %v1713_v45 }
 0x3f2   : > { %1707 = vmatmul.mubr.msk.f32.vlgmr.msra.gmra.mrb[0].mxu1 %vm425_vm5, %v661_v52 }
 0x4c5   : > { %v2165_v2 = vpop.f32.mrb[0].mxu1 }
 0x4c6   : > { %v2167_v3 = vpop.f32.mrb[1].mxu1 }
 0x4c7 LB: >> { %vm848_vm2 = vcmask 23552   ;;  %v846_v4 = vmul.f32 %v1914_v63, %v1914_v63  ;;  %v847_v5 = vmul.f32 %v1910_v0, %v1910_v0  ;;  %v856_v8 = vmul.f32 -2.0, %v1910_v0  ;;  %s1924_s27 = smov 1   ;;  %s1928_s8 = smov 127   ;;  %s1918_s7 = sphi %s2173_s7, %s839_s7   ;;  %v1914_v63 = vphi %v832_v63, %v1357_v63   ;;  %v1910_v0 = vphi %v833_v0, %v1359_v0  }
 0x4c8   : >> { %v868_v9 = vcombine.high %v2159_v61, %v2159_v61  ;;  %vm876_vm11 = vcmask 1043456   ;;  %v855_v10 = vmul.f32 -2.0, %v1914_v63  ;;  %v1925_v11 = vmov 0.0   ;;  %s839_s7 = sadd.s32 1, %s1918_s7  }
 0x4c9   : >> { %v849_v6 = vsel %vm848_vm2, %v846_v4, 0.0  ;;  %v852_v7 = vsel %vm848_vm2, %v847_v5, 0.0  ;;  %945 = vmatprep.mubr.f32.mxu0 %v1925_v11  ;;  %vm869_vm12 = vcmask 31744   ;;  %p836_p5 = scmp.ge.s32.totalorder %s839_s7, 10  }
 0x4ca   : >> { %850 = vadd.xlane.f32.xlu0 %v849_v6  ;;  %853 = vadd.xlane.f32.xlu1 %v852_v7 }
 0x4cb   : >> { %1666 = vmatprep.subr.msk.mxu0 %vm876_vm11, %v868_v9  ;;  %1241 = vmatprep.subr.mxu1 %v868_v9 }
 0x4cc   : >> { %1667 = vmatpush1.msk.msra.mxu0 %vm876_vm11, %v2159_v61  ;;  %1242 = vmatpush1.xpose.msra.mxu1 %v2159_v61 }
 0x4db   : >> { %861 = vrot.lane.b32.xlu1 %v856_v8, %s1924_s27 }
 0x4e0   : >> { %859 = vrot.lane.b32.xlu0 %v855_v10, %s1924_s27 }
 0x557   : >> { %v851_v12 = vpop.xlane.xlu0 %850  ;;  %v854_v13 = vpop.xlane.xlu1 %853 }
 0x55b   : >> { %v860_v14 = vpop.permute.xlu0 %859  ;;  %v862_v16 = vpop.permute.xlu1 %861 }
 0x55c   : >> { %v865_v17 = vsel %vm351_vm3, %v851_v12, %v860_v14  ;;  %v866_v19 = vsel %vm351_vm3, %v854_v13, %v862_v16 }
 0x55d   : >> { %1668 = vmatmul.mubr.msk.f32.vlgmr.msra.gmra.mrb[0].mxu0 %vm869_vm12, %v865_v17 }
 0x55e   : >> { %951 = vmatprep.mubr.f32.mxu0 %v1925_v11 }
 0x561   : >> { %1669 = vmatmul.mubr.msk.f32.gmra.mrb[2].mxu0 %vm869_vm12, %v866_v19 }
 0x630   : >> { %v2198_v20 = vpop.f32.mrb[0].mxu0 }
 0x631   : >> { %v2200_v21 = vpop.f32.mrb[1].mxu0  ;;  %v960_v22 = vrot.slane %v2198_v20, 7 }
 0x632   : >> { %v961_v23 = vrot.slane %v2200_v21, 7 }
 0x633   : >> { %vm964_vm13 = vcmp.lt.f32.partialorder %v2198_v20, %v960_v22 }
 0x634   : >> { %v2205_v24 = vpop.f32.mrb[2].mxu0  ;;  %vm965_vm14 = vcmp.lt.f32.partialorder %v2200_v21, %v961_v23  ;;  %v966_v25 = vsel %vm964_vm13, %v2198_v20, %v960_v22  ;;  %v968_v26 = vsel %vm964_vm13, 1.0, %v1925_v11 }
 0x635   : >> { %v2209_v27 = vpop.f32.mrb[3].mxu0  ;;  %v967_v28 = vsel %vm965_vm14, %v2200_v21, %v961_v23  ;;  %v969_v29 = vsel %vm965_vm14, 1.0, %v1925_v11  ;;  %v972_v30 = vrot.slane %v966_v25, 7  ;;  %v982_v31 = vrot.slane %v968_v26, 7 }
 0x636   : >> { %v973_v32 = vrot.slane %v967_v28, 7  ;;  %v983_v33 = vrot.slane %v969_v29, 7 }
 0x637   : >> { %vm976_vm15 = vcmp.lt.f32.partialorder %v2198_v20, %v972_v30 }
 0x638   : >> { %vm977_vm4 = vcmp.lt.f32.partialorder %v2200_v21, %v973_v32  ;;  %v978_v34 = vsel %vm976_vm15, %v2198_v20, %v972_v30  ;;  %v986_v35 = vsel %vm976_vm15, 2.0, %v982_v31 }
 0x639   : >> { %v979_v36 = vsel %vm977_vm4, %v2200_v21, %v973_v32  ;;  %v987_v37 = vsel %vm977_vm4, 2.0, %v983_v33  ;;  %v990_v38 = vrot.slane %v978_v34, 7  ;;  %v1000_v39 = vrot.slane %v986_v35, 7 }
 0x63a   : >> { %v991_v40 = vrot.slane %v979_v36, 7  ;;  %v1001_v41 = vrot.slane %v987_v37, 7 }
 0x63b   : >> { %vm994_vm6 = vcmp.lt.f32.partialorder %v2198_v20, %v990_v38 }
 0x63c   : >> { %vm995_vm7 = vcmp.lt.f32.partialorder %v2200_v21, %v991_v40  ;;  %v996_v15 = vsel %vm994_vm6, %v2198_v20, %v990_v38  ;;  %v1004_v42 = vsel %vm994_vm6, 3.0, %v1000_v39 }
 0x63d   : >> { %v997_v43 = vsel %vm995_vm7, %v2200_v21, %v991_v40  ;;  %v1005_v46 = vsel %vm995_vm7, 3.0, %v1001_v41  ;;  %v1008_v47 = vrot.slane %v996_v15, 7  ;;  %v1018_v18 = vrot.slane %v1004_v42, 7 }
 0x63e   : >> { %v1009_v51 = vrot.slane %v997_v43, 7  ;;  %v1019_v54 = vrot.slane %v1005_v46, 7 }
 0x63f   : >> { %vm1012_vm8 = vcmp.lt.f32.partialorder %v2198_v20, %v1008_v47 }
 0x640   : >> { %vm1013_vm9 = vcmp.lt.f32.partialorder %v2200_v21, %v1009_v51  ;;  %v1014_v55 = vsel %vm1012_vm8, %v2198_v20, %v1008_v47  ;;  %v1022_v56 = vsel %vm1012_vm8, 4.0, %v1018_v18 }
 0x641   : >> { %v1015_v57 = vsel %vm1013_vm9, %v2200_v21, %v1009_v51  ;;  %v1023_v58 = vsel %vm1013_vm9, 4.0, %v1019_v54  ;;  %v1026_v59 = vrot.slane %v1014_v55, 7  ;;  %v1036_v44 = vrot.slane %v1022_v56, 7 }
 0x642   : >> { %v1027_v60 = vrot.slane %v1015_v57, 7  ;;  %v1037_v45 = vrot.slane %v1023_v58, 7 }
 0x643   : >> { %vm1030_vm10 = vcmp.lt.f32.partialorder %v2198_v20, %v1026_v59 }
 0x644   : >> { %vm1031_vm0 = vcmp.lt.f32.partialorder %v2200_v21, %v1027_v60  ;;  %v1032_v52 = vsel %vm1030_vm10, %v2198_v20, %v1026_v59  ;;  %v1040_v4 = vsel %vm1030_vm10, 5.0, %v1036_v44 }
 0x645   : >> { %v1033_v5 = vsel %vm1031_vm0, %v2200_v21, %v1027_v60  ;;  %v1041_v6 = vsel %vm1031_vm0, 5.0, %v1037_v45  ;;  %v1044_v7 = vrot.slane %v1032_v52, 7  ;;  %v1054_v8 = vrot.slane %v1040_v4, 7 }
 0x646   : >> { %v1045_v9 = vrot.slane %v1033_v5, 7  ;;  %v1055_v10 = vrot.slane %v1041_v6, 7 }
 0x647   : >> { %vm1048_vm1 = vcmp.lt.f32.partialorder %v2198_v20, %v1044_v7 }
 0x648   : >> { %vm1049_vm2 = vcmp.lt.f32.partialorder %v2200_v21, %v1045_v9  ;;  %v1050_v11 = vsel %vm1048_vm1, %v2198_v20, %v1044_v7  ;;  %v1058_v12 = vsel %vm1048_vm1, 6.0, %v1054_v8 }
 0x649   : >> { %v1051_v13 = vsel %vm1049_vm2, %v2200_v21, %v1045_v9  ;;  %v1059_v14 = vsel %vm1049_vm2, 6.0, %v1055_v10  ;;  %v1062_v16 = vrot.slane %v1050_v11, 7  ;;  %v1072_v17 = vrot.slane %v1058_v12, 7 }
 0x64a   : >> { %v1063_v19 = vrot.slane %v1051_v13, 7  ;;  %v1073_v22 = vrot.slane %v1059_v14, 7 }
 0x64b   : >> { %vm1066_vm11 = vcmp.lt.f32.partialorder %v2198_v20, %v1062_v16 }
 0x64c   : >> { %vm1067_vm12 = vcmp.lt.f32.partialorder %v2200_v21, %v1063_v19  ;;  %v1068_v23 = vsel %vm1066_vm11, %v2198_v20, %v1062_v16  ;;  %v1076_v25 = vsel %vm1066_vm11, 7.0, %v1072_v17 }
 0x64d   : >> { %v1069_v26 = vsel %vm1067_vm12, %v2200_v21, %v1063_v19  ;;  %v1077_v28 = vsel %vm1067_vm12, 7.0, %v1073_v22  ;;  %v1080_v29 = vrot.slane %v1068_v23, 7  ;;  %v1090_v30 = vrot.slane %v1076_v25, 7 }
 0x64e   : >> { %v1081_v31 = vrot.slane %v1069_v26, 7  ;;  %v1091_v32 = vrot.slane %v1077_v28, 7 }
 0x64f   : >> { %vm1084_vm13 = vcmp.lt.f32.partialorder %v2205_v24, %v1080_v29 }
 0x650   : >> { %vm1085_vm14 = vcmp.lt.f32.partialorder %v2209_v27, %v1081_v31  ;;  %v1086_v33 = vsel %vm1084_vm13, %v2205_v24, %v1080_v29  ;;  %v1094_v34 = vsel %vm1084_vm13, 8.0, %v1090_v30  ;;  %v1222_v30 = vsub.s32 7, %v2153_v49 }
 0x651   : >> { %v1087_v35 = vsel %vm1085_vm14, %v2209_v27, %v1081_v31  ;;  %v1095_v36 = vsel %vm1085_vm14, 8.0, %v1091_v32  ;;  %v1098_v37 = vrot.slane %v1086_v33, 7  ;;  %v1108_v20 = vrot.slane %v1094_v34, 7 }
 0x652   : >> { %v1099_v38 = vrot.slane %v1087_v35, 7  ;;  %v1109_v39 = vrot.slane %v1095_v36, 7 }
 0x653   : >> { %vm1102_vm15 = vcmp.lt.f32.partialorder %v2205_v24, %v1098_v37 }
 0x654   : >> { %vm1103_vm4 = vcmp.lt.f32.partialorder %v2209_v27, %v1099_v38  ;;  %v1104_v21 = vsel %vm1102_vm15, %v2205_v24, %v1098_v37  ;;  %v1112_v40 = vsel %vm1102_vm15, 9.0, %v1108_v20 }
 0x655   : >> { %v1105_v41 = vsel %vm1103_vm4, %v2209_v27, %v1099_v38  ;;  %v1113_v15 = vsel %vm1103_vm4, 9.0, %v1109_v39  ;;  %v1116_v42 = vrot.slane %v1104_v21, 7  ;;  %v1126_v43 = vrot.slane %v1112_v40, 7 }
 0x656   : >> { %v1117_v46 = vrot.slane %v1105_v41, 7  ;;  %v1127_v47 = vrot.slane %v1113_v15, 7  ;;  %v1926_v15 = vmov 1.0  }
 0x657   : >> { %vm1120_vm6 = vcmp.lt.f32.partialorder %v2205_v24, %v1116_v42 }
 0x658   : >> { %vm1121_vm7 = vcmp.lt.f32.partialorder %v2209_v27, %v1117_v46  ;;  %v1122_v18 = vsel %vm1120_vm6, %v2205_v24, %v1116_v42  ;;  %v1130_v51 = vsel %vm1120_vm6, 10.0, %v1126_v43  ;;  %v1927_v43 = vmov 0  }
 0x659   : >> { %v1123_v54 = vsel %vm1121_vm7, %v2209_v27, %v1117_v46  ;;  %v1131_v55 = vsel %vm1121_vm7, 10.0, %v1127_v47  ;;  %v1134_v56 = vrot.slane %v1122_v18, 7  ;;  %v1144_v57 = vrot.slane %v1130_v51, 7  ;;  %1850 = vset.pattern.permute.xlu0 %v1927_v43  ;;  %1849 = vset.pattern.permute.xlu1 %v1927_v43 }
 0x65a   : >> { %v1135_v58 = vrot.slane %v1123_v54, 7  ;;  %v1145_v59 = vrot.slane %v1131_v55, 7 }
 0x65b   : >> { %vm1138_vm8 = vcmp.lt.f32.partialorder %v2205_v24, %v1134_v56 }
 0x65c   : >> { %vm1139_vm9 = vcmp.lt.f32.partialorder %v2209_v27, %v1135_v58  ;;  %v1140_v44 = vsel %vm1138_vm8, %v2205_v24, %v1134_v56  ;;  %v1148_v60 = vsel %vm1138_vm8, 11.0, %v1144_v57 }
 0x65d   : >> { %v1141_v45 = vsel %vm1139_vm9, %v2209_v27, %v1135_v58  ;;  %v1149_v52 = vsel %vm1139_vm9, 11.0, %v1145_v59  ;;  %v1152_v4 = vrot.slane %v1140_v44, 7  ;;  %v1162_v5 = vrot.slane %v1148_v60, 7 }
 0x65e   : >> { %v1153_v6 = vrot.slane %v1141_v45, 7  ;;  %v1163_v7 = vrot.slane %v1149_v52, 7 }
 0x65f   : >> { %vm1156_vm10 = vcmp.lt.f32.partialorder %v2205_v24, %v1152_v4 }
 0x660   : >> { %vm1157_vm0 = vcmp.lt.f32.partialorder %v2209_v27, %v1153_v6  ;;  %v1158_v8 = vsel %vm1156_vm10, %v2205_v24, %v1152_v4  ;;  %v1166_v9 = vsel %vm1156_vm10, 12.0, %v1162_v5 }
 0x661   : >> { %v1159_v10 = vsel %vm1157_vm0, %v2209_v27, %v1153_v6  ;;  %v1167_v11 = vsel %vm1157_vm0, 12.0, %v1163_v7  ;;  %v1170_v12 = vrot.slane %v1158_v8, 7  ;;  %v1180_v13 = vrot.slane %v1166_v9, 7 }
 0x662   : >> { %v1171_v14 = vrot.slane %v1159_v10, 7  ;;  %v1181_v16 = vrot.slane %v1167_v11, 7  ;;  %v1420_v11 = vsel (%p836_p5), %vm425_vm5, %v2167_v3, inf }
 0x663   : >> { %vm1174_vm1 = vcmp.lt.f32.partialorder %v2205_v24, %v1170_v12 }
 0x664   : >> { %vm1175_vm2 = vcmp.lt.f32.partialorder %v2209_v27, %v1171_v14  ;;  %v1176_v17 = vsel %vm1174_vm1, %v2205_v24, %v1170_v12  ;;  %v1184_v19 = vsel %vm1174_vm1, 13.0, %v1180_v13  ;;  %v1929_v12 = vmov (%p836_p5), 0  }
 0x665   : >> { %v1177_v22 = vsel %vm1175_vm2, %v2209_v27, %v1171_v14  ;;  %v1185_v23 = vsel %vm1175_vm2, 13.0, %v1181_v16  ;;  %v1188_v25 = vrot.slane %v1176_v17, 7  ;;  %v1198_v26 = vrot.slane %v1184_v19, 7 }
 0x666   : >> { %v1189_v28 = vrot.slane %v1177_v22, 7  ;;  %v1199_v29 = vrot.slane %v1185_v23, 7  ;;  %v1423_v16 = vsel (%p836_p5), %vm425_vm5, %v2165_v2, inf  ;;  %v1433_v22 = vsel (%p836_p5), %vm425_vm5, %v2167_v3, -inf }
 0x667   : >> { %vm1192_vm11 = vcmp.lt.f32.partialorder %v2205_v24, %v1188_v25 }
 0x668   : >> { %vm1193_vm12 = vcmp.lt.f32.partialorder %v2209_v27, %v1189_v28  ;;  %v1194_v31 = vsel %vm1192_vm11, %v2205_v24, %v1188_v25  ;;  %v1202_v32 = vsel %vm1192_vm11, 14.0, %v1198_v26 }
 0x669   : >> { %v1195_v33 = vsel %vm1193_vm12, %v2209_v27, %v1189_v28  ;;  %v1203_v34 = vsel %vm1193_vm12, 14.0, %v1199_v29  ;;  %v1206_v35 = vrot.slane %v1194_v31, 7  ;;  %v1214_v36 = vrot.slane %v1202_v32, 7 }
 0x66a   : >> { %v1207_v37 = vrot.slane %v1195_v33, 7  ;;  %v1215_v20 = vrot.slane %v1203_v34, 7 }
 0x66b   : >> { %vm1210_vm13 = vcmp.lt.f32.partialorder %v2205_v24, %v1206_v35 }
 0x66c   : >> { %vm1211_vm14 = vcmp.lt.f32.partialorder %v2209_v27, %v1207_v37  ;;  %v1218_v38 = vsel %vm1210_vm13, 15.0, %v1214_v36 }
 0x66d   : >> { %v1219_v39 = vsel %vm1211_vm14, 15.0, %v1215_v20  ;;  %v1223_v21 = vrot.slane %v1218_v38, %v1222_v30 }
 0x66e   : >> { %v1227_v40 = vrot.slane %v1219_v39, %v1222_v30 }
 0x66f   : >> { %vm2277_vm4 = vcmp.eq.f32.partialorder %v1223_v21, %v830_v62  ;;  %vm2293_vm7 = vcmp.eq.f32.partialorder %v1223_v21, %v831_v1 }
 0x670   : >> { %vm2269_vm15 = vcmp.eq.f32.partialorder %v1227_v40, %v830_v62  ;;  %vm2285_vm6 = vcmp.eq.f32.partialorder %v1227_v40, %v831_v1  ;;  %v1678_v25 = vsel (%p836_p5), %vm2277_vm4, 1.0, %v1923_v48  ;;  %v1680_v28 = vsel (%p836_p5), %vm2293_vm7, 1.0, %v1923_v48 }
 0x671   : >> { %1674 = vmatprep.mubr.msk.f32.mxu1 %vm2269_vm15, %v1926_v15  ;;  %v1679_v26 = vsel (%p836_p5), %vm2269_vm15, 1.0, %v1923_v48  ;;  %v1681_v29 = vsel (%p836_p5), %vm2285_vm6, 1.0, %v1923_v48 }
 0x672   : >> { %1675 = vmatmul.mubr.msk.f32.vlgmr.msra.gmra.mrb[0].mxu1 %vm2277_vm4, %v1926_v15 }
 0x673   : >> { %1676 = vmatprep.mubr.msk.f32.mxu1 %vm2285_vm6, %v1926_v15 }
 0x676   : >> { %1677 = vmatmul.mubr.msk.f32.gmra.mrb[2].mxu1 %vm2293_vm7, %v1926_v15 }
 0x745   : >> { %v1307_v46 = vpop.f32.mrb[0].mxu1 }
 0x746   : >> { %v1318_v47 = vmax.f32 %v1307_v46, 1.0  ;;  %v1309_v18 = vpop.f32.mrb[1].mxu1  ;;  %vm1316_vm8 = vcmp.gt.f32.partialorder %v1307_v46, 0.0  ;;  %v1362_v9 = vmul.f32 (%p836_p5), 0.00390625, %v1307_v46 }
 0x747   : >> { %v1334_v51 = vsel %vm1316_vm8, 1, %v1927_v43 }
 0x748   : >> { %1322 = vperm.xlu1 %1849, %v1318_v47   ;;  %1337 = vperm.xlu0 %1850, %v1334_v51   ;;  %v1364_v13 = vadd.f32 (%p836_p5), 1e-09, %v1362_v9 }
 0x749   : >> { %v1312_v54 = vpop.f32.mrb[2].mxu1 }
 0x74a   : >> { %v1319_v55 = vmax.f32 %v1312_v54, 1.0  ;;  %v1314_v56 = vpop.f32.mrb[3].mxu1  ;;  %vm1317_vm9 = vcmp.gt.f32.partialorder %v1312_v54, 0.0  ;;  %v1363_v10 = vmul.f32 (%p836_p5), 0.00390625, %v1312_v54 }
 0x74b   : >> { %v1335_v57 = vsel %vm1317_vm9, 1, %v1927_v43 }
 0x74c   : >> { %1327 = vperm.xlu1 %1849, %v1319_v55   ;;  %1348 = vrot.lane.b32.xlu0 %v1910_v0, %s1924_s27  ;;  %v1365_v14 = vadd.f32 (%p836_p5), 1e-09, %v1363_v10 }
 0x74d   : > { %1855 = vset.pattern.permute.xlu0 (%p836_p5), %v1929_v12 }
 0x750   : >> { %1340 = vperm.xlu1 %1849, %v1335_v57  }
 0x754   : >> { %1346 = vrot.lane.b32.xlu1 %v1914_v63, %s1924_s27 }
 0x7c7   : >> { %v1323_v58 = vpop.permute.xlu1 %1322  ;;  %v1338_v60 = vpop.permute.xlu0 %1337 }
 0x7c8   : >> { %1851 = vrcp.f32 %v1323_v58  ;;  %vm1342_vm10 = vcmp.eq.s32.totalorder %v1338_v60, 1 }
 0x7cb   : >> { %v1328_v59 = vpop.permute.xlu1 %1327  ;;  %v1349_v0 = vpop.permute.xlu0 %1348 }
 0x7cc   : >> { %1853 = vrcp.f32 %v1328_v59 }
 0x7cd   : > { %1856 = vlog2.f32 (%p836_p5), %v1364_v13 }
 0x7ce   : > { %1858 = vlog2.f32 (%p836_p5), %v1365_v14 }
 0x7cf   : >> { %v1341_v44 = vpop.permute.xlu1 %1340 }
 0x7d0   : >> { %vm1343_vm0 = vcmp.eq.s32.totalorder %v1341_v44, 1 }
 0x7d2   : >> { %v1852_v45 = vpop.eup %1851 }
 0x7d3   : >> { %v1347_v52 = vpop.permute.xlu1 %1346  ;;  %v1331_v4 = vmul.f32 %v1852_v45, %v1307_v46 }
 0x7d5   : >> { %v1352_v5 = vsel %vm1342_vm10, %v1331_v4, %v1347_v52 }
 0x7d6   : >> { %v1854_v6 = vpop.eup %1853  ;;  %1356 = vrot.lane.b32.xlu1 %v1352_v5, %s1928_s8 }
 0x7d7   : >> { %v1333_v7 = vmul.f32 %v1854_v6, %v1312_v54  ;;  %v1857_v50 = vpop.eup (%p836_p5), %1856 }
 0x7d8   : > { %v1859_v61 = vpop.eup (%p836_p5), %1858  ;;  %v1367_v62 = vmul.f32 (%p836_p5), 0.6931472, %v1857_v50 }
 0x7d9   : >> { %v1353_v8 = vsel %vm1343_vm0, %v1333_v7, %v1349_v0  ;;  %v1369_v1 = vmul.f32 (%p836_p5), 0.6931472, %v1859_v61 }
 0x7da   : >> { %1358 = vrot.lane.b32.xlu0 %v1353_v8, %s1928_s8  ;;  %v1370_v17 = vsub.f32 (%p836_p5), 0.0, %v1367_v62  ;;  %v1930_v62 = vmov (%p836_p5), 1966171168  }
 0x7db   : > { %v1371_v19 = vsub.f32 (%p836_p5), 0.0, %v1369_v1  ;;  %v1476_v1 = vunpack.c.l.s4 (%p836_p5), %v1930_v62 }
 0x7de   : > { %1394 = vperm.xlu0 (%p836_p5), %1855, %v1370_v17   ;;  %v1477_v17 = vunpack.c.0.s8 (%p836_p5), %v1476_v1 }
 0x7e2   : > { %1399 = vperm.xlu0 (%p836_p5), %1855, %v1371_v19  }
 0x7fa   : > { %1421 = vmin.xlane.f32.xlu1 (%p836_p5), %v1420_v11 }
 0x7fe   : > { %1424 = vmin.xlane.f32.xlu1 (%p836_p5), %v1423_v16 }
 0x801   : > { %1434 = vmax.xlane.f32.xlu0 (%p836_p5), %v1433_v22  ;;  %v1480_v22 = vsub.s32 (%p836_p5), %v1477_v17, %v2153_v49 }
 0x846   : > { %838 = sbr.rel (!%p836_p5) target bundleno = 1223 (0x4c7), region = 115 }
 0x848   : >> { %v1357_v63 = vpop.permute.xlu1 %1356  }
 0x849   : > { %v1436_v63 = vsel (%p836_p5), %vm425_vm5, %v2165_v2, -inf }
 0x84a   : > { %1437 = vmax.xlane.f32.xlu1 (%p836_p5), %v1436_v63 }
 0x84c   : >> { %v1359_v0 = vpop.permute.xlu0 %1358  }
 0x85d   : > { %v1395_v23 = vpop.permute.xlu0 %1394 }
 0x85e   : > { %v1402_v31 = vmul.f32 %v1678_v25, %v1395_v23  ;;  %v1403_v32 = vmul.f32 %v1679_v26, %v1395_v23 }
 0x861   : > { %v1400_v30 = vpop.permute.xlu0 %1399 }
 0x862   : > { %v1404_v33 = vmul.f32 %v1680_v28, %v1400_v30  ;;  %v1405_v34 = vmul.f32 %v1681_v29, %v1400_v30 }
 0x864   : > { %v1406_v35 = vadd.f32 %v1404_v33, %v1402_v31  ;;  %v1413_v36 = vadd.f32 %v1405_v34, %v1403_v32 }
 0x866   : > { %v1407_v37 = vrot.slane %v1406_v35, 4  ;;  %v1414_v20 = vrot.slane %v1413_v36, 4 }
 0x868   : > { %v1408_v38 = vadd.f32 %v1407_v37, %v1406_v35  ;;  %v1415_v39 = vadd.f32 %v1414_v20, %v1413_v36 }
 0x86a   : > { %v1409_v21 = vrot.slane %v1408_v38, 2  ;;  %v1416_v40 = vrot.slane %v1415_v39, 2 }
 0x86c   : > { %v1410_v41 = vadd.f32 %v1409_v21, %v1408_v38  ;;  %v1417_v15 = vadd.f32 %v1416_v40, %v1415_v39 }
 0x86e   : > { %v1411_v24 = vrot.slane %v1410_v41, 1  ;;  %v1418_v42 = vrot.slane %v1417_v15, 1 }
 0x870   : > { %v1412_v43 = vadd.f32 %v1411_v24, %v1410_v41  ;;  %v1419_v27 = vadd.f32 %v1418_v42, %v1417_v15 }
 0x872   : > { %v1457_v48 = vmin.f32 %v1412_v43, %v1419_v27  ;;  %v1460_v46 = vmax.f32 %v1412_v43, %v1419_v27 }
 0x874   : > { %1458 = vmin.xlane.f32.xlu1 %v1457_v48 }
 0x878   : > { %1461 = vmax.xlane.f32.xlu1 %v1460_v46 }
 0x887   : > { %v1422_v47 = vpop.xlane.xlu1 %1421 }
 0x88b   : > { %v1425_v18 = vpop.xlane.xlu1 %1424 }
 0x88c   : > { %v1426_v51 = vmin.f32 %v1422_v47, %v1425_v18 }
 0x88e   : > { %v1427_v54 = vrot.slane %v1426_v51, 4  ;;  %v1435_v58 = vpop.xlane.xlu0 %1434 }
 0x890   : > { %v1428_v55 = vmin.f32 %v1426_v51, %v1427_v54 }
 0x892   : > { %v1429_v57 = vrot.slane %v1428_v55, 2 }
 0x894   : > { %v1430_v44 = vmin.f32 %v1428_v55, %v1429_v57 }
 0x896   : > { %v1431_v52 = vrot.slane %v1430_v44, 1 }
 0x898   : > { %v1432_v6 = vmin.f32 %v1430_v44, %v1431_v52 }
 0x89a   : > { %v1449_v10 = vsub.f32 %v2167_v3, %v1432_v6  ;;  %v1450_v11 = vsub.f32 %v2165_v2, %v1432_v6 }
 0x8d7   : > { %v1438_v56 = vpop.xlane.xlu1 %1437 }
 0x8d8   : > { %v1439_v59 = vmax.f32 %v1435_v58, %v1438_v56 }
 0x8da   : > { %v1440_v60 = vrot.slane %v1439_v59, 4 }
 0x8dc   : > { %v1441_v45 = vmax.f32 %v1439_v59, %v1440_v60 }
 0x8de   : > { %v1442_v4 = vrot.slane %v1441_v45, 2 }
 0x8e0   : > { %v1443_v5 = vmax.f32 %v1441_v45, %v1442_v4 }
 0x8e2   : > { %v1444_v0 = vrot.slane %v1443_v5, 1 }
 0x8e4   : > { %v1445_v7 = vmax.f32 %v1443_v5, %v1444_v0 }
 0x8e6   : > { %v1446_v8 = vsub.f32 %v1445_v7, %v1432_v6 }
 0x8e8   : > { %vm1447_vm3 = vcmp.eq.f32.partialorder %v1446_v8, 0.0 }
 0x8e9   : > { %v1448_v9 = vsel %vm1447_vm3, 1.0, %v1446_v8 }
 0x8ea   : > { %1860 = vrcp.f32 %v1448_v9 }
 0x8f4   : > { %v1861_v12 = vpop.eup %1860 }
 0x8f5   : > { %v1453_v13 = vmul.f32 %v1861_v12, %v1449_v10  ;;  %v1454_v14 = vmul.f32 %v1861_v12, %v1450_v11 }
 0x8f7   : > { %1455 = vst.msk [vmem:[%s1990_s13] sm:$0xff] %vm425_vm5, %v1453_v13  ;;  %1456 = vst.msk [vmem:[%s1990_s13 + $0x8] sm:$0xff] %vm425_vm5, %v1454_v14  ;;  %vm1492_vm5 = vcmp.lt.s32.totalorder %v827_v53, 256 }
 0x901   : > { %v1459_v16 = vpop.xlane.xlu1 %1458 }
 0x902   : > { %v1466_v3 = vsub.f32 %v1412_v43, %v1459_v16  ;;  %v1467_v19 = vsub.f32 %v1419_v27, %v1459_v16 }
 0x905   : > { %v1462_v63 = vpop.xlane.xlu1 %1461 }
 0x906   : > { %v1463_v50 = vsub.f32 %v1462_v63, %v1459_v16 }
 0x908   : > { %vm1464_vm1 = vcmp.eq.f32.partialorder %v1463_v50, 0.0 }
 0x909   : > { %v1465_v61 = vsel %vm1464_vm1, 1.0, %v1463_v50 }
 0x90a   : > { %1862 = vrcp.f32 %v1465_v61 }
 0x914   : > { %v1863_v2 = vpop.eup %1862 }
 0x915   : > { %v1470_v23 = vmul.f32 %v1863_v2, %v1466_v3  ;;  %v1471_v25 = vmul.f32 %v1863_v2, %v1467_v19 }
 0x917   : > { %v1474_v26 = vcombine.low %v1470_v23, %v1471_v25 }
 0x919   : > { %v1481_v28 = vrot.slane %v1474_v26, %v1480_v22 }
 0x91b   : > { %v1488_v29 = vrot.slane %v1481_v28, %v1480_v22 }
 0x91d   : > { %1494 = vst.msk [vmem:[%s1995_s17] sm:$0x3] %vm1492_vm5, %v1488_v29 }
 0x91e PF: > { %s17_s21 = sadd.s32 1, %s1894_s21  }
 0x91f   : > { %p14_p6 = scmp.ge.s32.totalorder %s17_s21, 4  }
 0x921   :  { %16 = sbr.rel (!%p14_p6) target bundleno = 1 (0x1), region = 126 }

</bundles_post_ra>
